<compile_context>
chip_gen: v7x
topology: tpu7x:2x2x1
jax: 0.10.0
libtpu: 0.0.40
codegen_flags: <defaults>
</compile_context>

<pallas_src>
import functools

import jax
import jax.numpy as jnp
from jax import lax
from jax.experimental import pallas as pl
from jax.experimental.pallas import tpu as pltpu

EPS = 1e-5                     # torch.nn.BatchNorm2d default
_MAX_STEP_PIXELS = 2048        # padded pixels per grid step (image-batching cap)


def _vmem_limit_bytes():
    """Generation-aware scoped-VMEM budget: 7/8 of physical VMEM capacity."""
    try:
        cap = int(pltpu.get_tpu_info().vmem_capacity_bytes)
    except Exception:          # query unavailable -> conservative (v7x) default
        cap = 64 * 1024 * 1024
    if cap <= 0:
        cap = 64 * 1024 * 1024
    return cap * 7 // 8


def _pick_img(n, m_pad):
    """Images per grid step: amortize per-step pipeline overhead on small
    images while keeping >= 2 grid steps (megacore) and a bounded footprint."""
    best = 1
    for img in range(2, n + 1):
        if n % img or img * m_pad > _MAX_STEP_PIXELS or n // img < 2:
            continue
        best = img
    return best


# --------------------------- in-kernel helpers ---------------------------
def _conv3x3_taps(a, w_ref, Wp):
    """3x3 'same' conv on a zero-halo flattened image as 9 accumulated dots.

    `a` is (C, Mp) with exact zeros in halo / lane-tail columns; w_ref is the
    (9, Cout, C) tap-packed weight.  Each rolled tap feeds the MXU directly
    (no im2col buffer, no VMEM stores); the adds are chained into a single
    f32 accumulator so v7x can accumulate in-place in the MXU result buffer.
    Roll wraparound only pollutes halo/tail outputs (masked / cropped later).
    """
    mp = a.shape[-1]
    acc = None
    k = 0
    for dh in (-1, 0, 1):
        for dw in (-1, 0, 1):
            off = dh * Wp + dw
            t = a if off == 0 else pltpu.roll(a, shift=(-off) % mp, axis=1)
            d = jnp.dot(w_ref[k], t, preferred_element_type=jnp.float32)
            acc = d if acc is None else acc + d
            k += 1
    return acc


def _write_stats(stat_ref, s_tot, ss_tot):
    """Lane-dense (Cout, 128) stats store: sum in lane 0, sumsq in lane 1."""
    lane = lax.broadcasted_iota(jnp.int32, stat_ref.shape, 1)
    stat_ref[...] = jnp.where(lane == 0, s_tot,
                              jnp.where(lane == 1, ss_tot, 0.0))


# ------------------------------- kernels -------------------------------
def _conv1_relu_kernel(Wp, img, cdt, x_ref, w_ref, mask_ref, y_ref, stat_ref):
    """conv1 (per-tap accumulated dots) + ReLU + bn1 partial sum / sumsq."""
    mask = mask_ref[...]                                   # (1, m_pad) f32 0/1
    cout = stat_ref.shape[0]
    s_tot = jnp.zeros((cout, 1), jnp.float32)
    ss_tot = jnp.zeros((cout, 1), jnp.float32)
    for i in range(img):
        acc = _conv3x3_taps(x_ref[i], w_ref, Wp)           # (Cout, m_pad) f32
        y = jnp.maximum(acc, 0.0)
        ym = y * mask
        s_tot = s_tot + jnp.sum(ym, axis=1, keepdims=True)
        ss_tot = ss_tot + jnp.sum(ym * ym, axis=1, keepdims=True)
        y_ref[i] = y.astype(cdt)
    _write_stats(stat_ref, s_tot, ss_tot)


def _bn1_conv2_relu_kernel(H, W, Wp, img, bottleneck, cdt, *refs):
    """bn1 affine + conv2 (+ folded 1x1 shortcut / identity residual) + ReLU
    + bn2 partial stats; the activation is stored already cropped to
    (Cout, H*W), so the bn2 pass never touches halo/tail columns again."""
    if bottleneck:
        (y1_ref, x_ref, w_ref, wsc_ref, sc1_ref, sh1_ref, mask_ref,
         z_ref, stat_ref) = refs
    else:
        (y1_ref, x_ref, w_ref, sc1_ref, sh1_ref, mask_ref,
         z_ref, stat_ref) = refs
        wsc_ref = None
    m_pad = y1_ref.shape[-1]
    hw = H * W
    mask = mask_ref[...]                                   # (1, m_pad) f32
    sc1 = sc1_ref[...]                                     # (Cout, 1) f32
    sh1 = sh1_ref[...]
    wsc_w = wsc_ref[...] if bottleneck else None           # (Cout, Cin)
    lane = lax.broadcasted_iota(jnp.int32, (1, m_pad), 1)
    cout = stat_ref.shape[0]
    s_tot = jnp.zeros((cout, 1), jnp.float32)
    ss_tot = jnp.zeros((cout, 1), jnp.float32)
    for i in range(img):
        # bn1 as a per-channel affine; the mask re-zeroes halo/tail columns so
        # the rolled taps of conv2 keep exact zero-padding semantics.
        a = ((y1_ref[i].astype(jnp.float32) * sc1 + sh1) * mask).astype(cdt)
        acc = _conv3x3_taps(a, w_ref, Wp)                  # (Cout, m_pad) f32
        if bottleneck:
            acc = acc + jnp.dot(wsc_w, x_ref[i],
                                preferred_element_type=jnp.float32)
        else:
            acc = acc + x_ref[i].astype(jnp.float32)       # identity residual
        z = jnp.maximum(acc, 0.0)
        zm = z * mask
        s_tot = s_tot + jnp.sum(zm, axis=1, keepdims=True)
        ss_tot = ss_tot + jnp.sum(zm * zm, axis=1, keepdims=True)
        # crop halo/tail columns: per output row h, the interior of padded row
        # h+1 is brought to lanes [h*W, (h+1)*W) with an XLU roll + select
        # (both off the critical VALU/vst slots), then stored densely.
        zc = z.astype(cdt)
        crop = jnp.zeros_like(zc)
        for h in range(H):
            shift = 2 * h + Wp + 1                         # (h+1)*Wp+1 - h*W
            rolled = pltpu.roll(zc, shift=(-shift) % m_pad, axis=1)
            sel = (lane >= h * W) & (lane < (h + 1) * W)
            crop = jnp.where(sel, rolled, crop)
        z_ref[i] = crop[:, :hw]
    _write_stats(stat_ref, s_tot, ss_tot)


def _bn2_kernel(z_ref, sc_ref, sh_ref, o_ref):
    """bn2 as a per-channel affine on the already-cropped activation."""
    o_ref[...] = (z_ref[...].astype(jnp.float32) * sc_ref[...][None]
                  + sh_ref[...][None])


# ------------------------------- wrapper -------------------------------
@functools.partial(jax.jit, static_argnames=("stride", "compute_dtype"))
def resblock_pallas(x, w1, w2, wsc, g1, b1, g2, b2, stride=1,
                    compute_dtype=jnp.bfloat16):
    """ResBlock forward, NCHW f32 in/out, training-mode BatchNorm batch stats."""
    assert stride == 1  # TODO(synk): stride != 1 not implemented in the kernel
    N, Cin, H, W = x.shape
    Cout = w1.shape[0]
    Hp, Wp = H + 2, W + 2
    m_img = Hp * Wp
    m_pad = ((m_img + 127) // 128) * 128     # lane-align per-image axis
    HW = H * W
    cdt = compute_dtype
    is_bottleneck = (stride != 1) or (Cin != Cout)
    if is_bottleneck:
        assert wsc is not None

    img = _pick_img(N, m_pad)                # images per grid step
    n_steps = N // img

    # ---- layout glue: zero-halo pad + flatten (no big transpose) ----
    x_pad = jnp.pad(x, ((0, 0), (0, 0), (1, 1), (1, 1))).reshape(N, Cin, m_img)
    x_pad = jnp.pad(x_pad, ((0, 0), (0, 0), (0, m_pad - m_img))).astype(cdt)

    # exact interior mask (1 for real pixels, 0 for halo / lane tail)
    col = jnp.arange(m_pad, dtype=jnp.int32)
    hh, ww = col // Wp, col % Wp
    mask = (((col < m_img) & (hh >= 1) & (hh <= H) & (ww >= 1) & (ww <= W))
            .astype(jnp.float32).reshape(1, m_pad))

    # weights packed tap-major: w[k] is the (Cout, C) slice for tap k
    w1p = jnp.transpose(w1, (2, 3, 0, 1)).reshape(9, Cout, Cin).astype(cdt)
    w2p = jnp.transpose(w2, (2, 3, 0, 1)).reshape(9, Cout, Cout).astype(cdt)
    wscp = wsc.reshape(Cout, Cin).astype(cdt) if is_bottleneck else None

    cparams = pltpu.CompilerParams(dimension_semantics=("parallel",),
                                   vmem_limit_bytes=_vmem_limit_bytes())

    act_spec = lambda C, M: pl.BlockSpec((img, C, M), lambda n: (n, 0, 0))
    const_spec = lambda shape: pl.BlockSpec(shape, lambda n: (0,) * len(shape))
    stat_spec = pl.BlockSpec((None, Cout, 128), lambda n: (n, 0, 0))
    stat_shape = jax.ShapeDtypeStruct((n_steps, Cout, 128), jnp.float32)

    # ---- pass 1: conv1 + relu + bn1 partial stats ----
    y1, st1 = pl.pallas_call(
        functools.partial(_conv1_relu_kernel, Wp, img, cdt),
        grid=(n_steps,),
        in_specs=[act_spec(Cin, m_pad), const_spec(w1p.shape),
                  const_spec(mask.shape)],
        out_specs=[act_spec(Cout, m_pad), stat_spec],
        out_shape=[jax.ShapeDtypeStruct((N, Cout, m_pad), cdt), stat_shape],
        compiler_params=cparams,
    )(x_pad, w1p, mask)

    def _fold_bn(st, g, b):
        # Chan / parallel-Welford combine of the per-step (sum, sumsq) partials.
        s, ss = st[:, :, 0], st[:, :, 1]           # (n_steps, Cout)
        n_part = img * HW
        n_tot = N * HW
        mean_p = s / n_part
        m2_p = ss - s * mean_p                     # per-partition sum (x-mean_p)^2
        mean = jnp.sum(s, axis=0) / n_tot
        m2 = jnp.sum(m2_p, axis=0) + n_part * jnp.sum((mean_p - mean) ** 2, axis=0)
        var = jnp.maximum(m2, 0.0) / n_tot
        rstd = lax.rsqrt(var + EPS)
        scale = (g * rstd).astype(jnp.float32).reshape(Cout, 1)
        shift = (b - mean * g * rstd).astype(jnp.float32).reshape(Cout, 1)
        return scale, shift

    sc1, sh1 = _fold_bn(st1, g1, b1)

    # ---- pass 2: bn1 affine + conv2 (+shortcut) + relu + bn2 partial stats ----
    ins = [y1, x_pad, w2p]
    in_specs = [act_spec(Cout, m_pad), act_spec(Cin, m_pad),
                const_spec(w2p.shape)]
    if is_bottleneck:
        ins.append(wscp)
        in_specs.append(const_spec(wscp.shape))
    ins += [sc1, sh1, mask]
    in_specs += [const_spec((Cout, 1)), const_spec((Cout, 1)),
                 const_spec(mask.shape)]

    z, st2 = pl.pallas_call(
        functools.partial(_bn1_conv2_relu_kernel,
                          H, W, Wp, img, is_bottleneck, cdt),
        grid=(n_steps,),
        in_specs=in_specs,
        out_specs=[act_spec(Cout, HW), stat_spec],
        out_shape=[jax.ShapeDtypeStruct((N, Cout, HW), cdt), stat_shape],
        compiler_params=cparams,
    )(*ins)

    sc2, sh2 = _fold_bn(st2, g2, b2)

    # ---- pass 3: bn2 affine on the cropped, lane-dense activation ----
    out = pl.pallas_call(
        _bn2_kernel,
        grid=(n_steps,),
        in_specs=[act_spec(Cout, HW), const_spec((Cout, 1)),
                  const_spec((Cout, 1))],
        out_specs=act_spec(Cout, HW),
        out_shape=jax.ShapeDtypeStruct((N, Cout, HW), jnp.float32),
        compiler_params=cparams,
    )(z, sc2, sh2)

    return out.reshape(N, Cout, H, W)        # free reshape, no crop needed


# ------------------------- pure-JAX reference -------------------------
def _bn_ref(x, g, b):
    mean = jnp.mean(x, axis=(0, 2, 3), keepdims=True)
    var = jnp.mean((x - mean) ** 2, axis=(0, 2, 3), keepdims=True)
    return (x - mean) * lax.rsqrt(var + EPS) * g.reshape(1, -1, 1, 1) \
        + b.reshape(1, -1, 1, 1)


def resblock_ref(x, w1, w2, wsc, g1, b1, g2, b2):
    dn = ('NCHW', 'OIHW', 'NCHW')
    conv = lambda a, w, p: lax.conv_general_dilated(
        a, w, (1, 1), ((p, p), (p, p)), dimension_numbers=dn,
        precision=lax.Precision.HIGHEST)
    out = conv(x, w1, 1)
    out = jnp.maximum(out, 0.0)
    out = _bn_ref(out, g1, b1)
    out = conv(out, w2, 1)
    residual = conv(x, wsc, 0) if wsc is not None else x
    out = out + residual
    out = jnp.maximum(out, 0.0)
    return _bn_ref(out, g2, b2)


# -------------------------------- test --------------------------------
if __name__ == "__main__":
    def make_case(key, N, Cin, Cout, H, W, bottleneck):
        ks = jax.random.split(key, 8)
        x = jax.random.normal(ks[0], (N, Cin, H, W), jnp.float32)
        w1 = 0.2 * jax.random.normal(ks[1], (Cout, Cin, 3, 3), jnp.float32)
        w2 = 0.2 * jax.random.normal(ks[2], (Cout, Cout, 3, 3), jnp.float32)
        wsc = (0.2 * jax.random.normal(ks[3], (Cout, Cin, 1, 1), jnp.float32)
               if bottleneck else None)
        g1 = 1.0 + 0.1 * jax.random.normal(ks[4], (Cout,), jnp.float32)
        b1 = 0.1 * jax.random.normal(ks[5], (Cout,), jnp.float32)
        g2 = 1.0 + 0.1 * jax.random.normal(ks[6], (Cout,), jnp.float32)
        b2 = 0.1 * jax.random.normal(ks[7], (Cout,), jnp.float32)
        return (x, w1, w2, wsc, g1, b1, g2, b2)

    k1, k2, k3 = jax.random.split(jax.random.PRNGKey(0), 3)
    cases = [
        ("bottleneck 2x(4->8) 16x16, 1 img/step", make_case(k1, 2, 4, 8, 16, 16, True)),
        ("identity   2x(8->8) 16x16, 1 img/step", make_case(k2, 2, 8, 8, 16, 16, False)),
        ("bottleneck 4x(4->8)   8x8, 2 img/step", make_case(k3, 4, 4, 8, 8, 8, True)),
    ]

    for name, args in cases:
        ref = resblock_ref(*args)

        # f32 MXU operands: tight algorithmic check
        out32 = jax.block_until_ready(
            resblock_pallas(*args, compute_dtype=jnp.float32))
        assert out32.shape == ref.shape
        err32 = float(jnp.max(jnp.abs(out32 - ref)))
        assert jnp.allclose(out32, ref, atol=2e-2, rtol=2e-2), \
            f"{name}: f32 max abs err {err32}"

        # bf16 MXU operands (f32 accumulation): fast path, looser tolerance
        out16 = jax.block_until_ready(
            resblock_pallas(*args, compute_dtype=jnp.bfloat16))
        err16 = float(jnp.max(jnp.abs(out16 - ref)))
        assert jnp.allclose(out16, ref, atol=6e-2, rtol=6e-2), \
            f"{name}: bf16 max abs err {err16}"

    print("KERNEL_OK")
</pallas_src>

<mosaic_0001>
module attributes {stable_mosaic.version = 11 : i64} {
  func.func @_conv1_relu_kernel(%arg0: i32, %arg1: memref<1x4x384xf32, #tpu.memory_space<vmem>>, %arg2: memref<9x8x4xf32, #tpu.memory_space<vmem>>, %arg3: memref<1x384xf32, #tpu.memory_space<vmem>>, %arg4: memref<1x8x384xf32, #tpu.memory_space<vmem>>, %arg5: memref<1x8x128xf32, #tpu.memory_space<vmem>>) attributes {dimension_semantics = [#tpu.dimension_semantics<parallel>], iteration_bounds = array<i64: 2>, scalar_prefetch = 0 : i64, scratch_operands = 0 : i64, tpu.core_type = #tpu.core_type<tc>, window_params = [{transform_indices = @transform_0, window_bounds = array<i64: 1, 4, 384>}, {pipeline_mode = #tpu.pipeline_mode<synchronous>, transform_indices = @transform_1, window_bounds = array<i64: 9, 8, 4>}, {pipeline_mode = #tpu.pipeline_mode<synchronous>, transform_indices = @transform_2, window_bounds = array<i64: 1, 384>}, {transform_indices = @transform_3, window_bounds = array<i64: 1, 8, 384>}, {transform_indices = @transform_4, window_bounds = array<i64: 1, 8, 128>}]} {
    %c0 = arith.constant 0 : index
    %c0_0 = arith.constant 0 : index
    %0 = vector.load %arg3[%c0, %c0_0] : memref<1x384xf32, #tpu.memory_space<vmem>>, vector<1x384xf32>
    %cst = arith.constant 0.000000e+00 : f32
    %1 = vector.broadcast %cst : f32 to vector<8x1xf32>
    %cst_1 = arith.constant 0.000000e+00 : f32
    %2 = vector.broadcast %cst_1 : f32 to vector<8x1xf32>
    %c0_2 = arith.constant 0 : index
    %c0_3 = arith.constant 0 : index
    %c0_4 = arith.constant 0 : index
    %3 = vector.load %arg1[%c0_2, %c0_3, %c0_4] : memref<1x4x384xf32, #tpu.memory_space<vmem>>, vector<1x4x384xf32>
    %4 = vector.shape_cast %3 : vector<1x4x384xf32> to vector<4x384xf32>
    %c19_i32 = arith.constant 19 : i32
    %5 = tpu.dynamic_rotate %4 by %c19_i32 dim 1 : vector<4x384xf32>, i32 -> vector<4x384xf32>
    %c0_5 = arith.constant 0 : index
    %c0_6 = arith.constant 0 : index
    %c0_7 = arith.constant 0 : index
    %6 = vector.load %arg2[%c0_5, %c0_6, %c0_7] : memref<9x8x4xf32, #tpu.memory_space<vmem>>, vector<1x8x4xf32>
    %7 = vector.shape_cast %6 : vector<1x8x4xf32> to vector<8x4xf32>
    %cst_8 = arith.constant dense<0.000000e+00> : vector<8x384xf32>
    %8 = tpu.matmul %7, %5, %cst_8 {dimension_numbers = #tpu.dot_dimension_numbers<[1], [0], [0], [1], [0, 0, 1, 1], [], []>} : vector<8x4xf32>, vector<4x384xf32>, vector<8x384xf32> -> vector<8x384xf32>
    %c18_i32 = arith.constant 18 : i32
    %9 = tpu.dynamic_rotate %4 by %c18_i32 dim 1 : vector<4x384xf32>, i32 -> vector<4x384xf32>
    %c1 = arith.constant 1 : index
    %c0_9 = arith.constant 0 : index
    %c0_10 = arith.constant 0 : index
    %10 = vector.load %arg2[%c1, %c0_9, %c0_10] : memref<9x8x4xf32, #tpu.memory_space<vmem>>, vector<1x8x4xf32>
    %11 = vector.shape_cast %10 : vector<1x8x4xf32> to vector<8x4xf32>
    %cst_11 = arith.constant dense<0.000000e+00> : vector<8x384xf32>
    %12 = tpu.matmul %11, %9, %cst_11 {dimension_numbers = #tpu.dot_dimension_numbers<[1], [0], [0], [1], [0, 0, 1, 1], [], []>} : vector<8x4xf32>, vector<4x384xf32>, vector<8x384xf32> -> vector<8x384xf32>
    %13 = arith.addf %8, %12 : vector<8x384xf32>
    %c17_i32 = arith.constant 17 : i32
    %14 = tpu.dynamic_rotate %4 by %c17_i32 dim 1 : vector<4x384xf32>, i32 -> vector<4x384xf32>
    %c2 = arith.constant 2 : index
    %c0_12 = arith.constant 0 : index
    %c0_13 = arith.constant 0 : index
    %15 = vector.load %arg2[%c2, %c0_12, %c0_13] : memref<9x8x4xf32, #tpu.memory_space<vmem>>, vector<1x8x4xf32>
    %16 = vector.shape_cast %15 : vector<1x8x4xf32> to vector<8x4xf32>
    %cst_14 = arith.constant dense<0.000000e+00> : vector<8x384xf32>
    %17 = tpu.matmul %16, %14, %cst_14 {dimension_numbers = #tpu.dot_dimension_numbers<[1], [0], [0], [1], [0, 0, 1, 1], [], []>} : vector<8x4xf32>, vector<4x384xf32>, vector<8x384xf32> -> vector<8x384xf32>
    %18 = arith.addf %13, %17 : vector<8x384xf32>
    %c1_i32 = arith.constant 1 : i32
    %19 = tpu.dynamic_rotate %4 by %c1_i32 dim 1 : vector<4x384xf32>, i32 -> vector<4x384xf32>
    %c3 = arith.constant 3 : index
    %c0_15 = arith.constant 0 : index
    %c0_16 = arith.constant 0 : index
    %20 = vector.load %arg2[%c3, %c0_15, %c0_16] : memref<9x8x4xf32, #tpu.memory_space<vmem>>, vector<1x8x4xf32>
    %21 = vector.shape_cast %20 : vector<1x8x4xf32> to vector<8x4xf32>
    %cst_17 = arith.constant dense<0.000000e+00> : vector<8x384xf32>
    %22 = tpu.matmul %21, %19, %cst_17 {dimension_numbers = #tpu.dot_dimension_numbers<[1], [0], [0], [1], [0, 0, 1, 1], [], []>} : vector<8x4xf32>, vector<4x384xf32>, vector<8x384xf32> -> vector<8x384xf32>
    %23 = arith.addf %18, %22 : vector<8x384xf32>
    %c4 = arith.constant 4 : index
    %c0_18 = arith.constant 0 : index
    %c0_19 = arith.constant 0 : index
    %24 = vector.load %arg2[%c4, %c0_18, %c0_19] : memref<9x8x4xf32, #tpu.memory_space<vmem>>, vector<1x8x4xf32>
    %25 = vector.shape_cast %24 : vector<1x8x4xf32> to vector<8x4xf32>
    %cst_20 = arith.constant dense<0.000000e+00> : vector<8x384xf32>
    %26 = tpu.matmul %25, %4, %cst_20 {dimension_numbers = #tpu.dot_dimension_numbers<[1], [0], [0], [1], [0, 0, 1, 1], [], []>} : vector<8x4xf32>, vector<4x384xf32>, vector<8x384xf32> -> vector<8x384xf32>
    %27 = arith.addf %23, %26 : vector<8x384xf32>
    %c383_i32 = arith.constant 383 : i32
    %28 = tpu.dynamic_rotate %4 by %c383_i32 dim 1 : vector<4x384xf32>, i32 -> vector<4x384xf32>
    %c5 = arith.constant 5 : index
    %c0_21 = arith.constant 0 : index
    %c0_22 = arith.constant 0 : index
    %29 = vector.load %arg2[%c5, %c0_21, %c0_22] : memref<9x8x4xf32, #tpu.memory_space<vmem>>, vector<1x8x4xf32>
    %30 = vector.shape_cast %29 : vector<1x8x4xf32> to vector<8x4xf32>
    %cst_23 = arith.constant dense<0.000000e+00> : vector<8x384xf32>
    %31 = tpu.matmul %30, %28, %cst_23 {dimension_numbers = #tpu.dot_dimension_numbers<[1], [0], [0], [1], [0, 0, 1, 1], [], []>} : vector<8x4xf32>, vector<4x384xf32>, vector<8x384xf32> -> vector<8x384xf32>
    %32 = arith.addf %27, %31 : vector<8x384xf32>
    %c367_i32 = arith.constant 367 : i32
    %33 = tpu.dynamic_rotate %4 by %c367_i32 dim 1 : vector<4x384xf32>, i32 -> vector<4x384xf32>
    %c6 = arith.constant 6 : index
    %c0_24 = arith.constant 0 : index
    %c0_25 = arith.constant 0 : index
    %34 = vector.load %arg2[%c6, %c0_24, %c0_25] : memref<9x8x4xf32, #tpu.memory_space<vmem>>, vector<1x8x4xf32>
    %35 = vector.shape_cast %34 : vector<1x8x4xf32> to vector<8x4xf32>
    %cst_26 = arith.constant dense<0.000000e+00> : vector<8x384xf32>
    %36 = tpu.matmul %35, %33, %cst_26 {dimension_numbers = #tpu.dot_dimension_numbers<[1], [0], [0], [1], [0, 0, 1, 1], [], []>} : vector<8x4xf32>, vector<4x384xf32>, vector<8x384xf32> -> vector<8x384xf32>
    %37 = arith.addf %32, %36 : vector<8x384xf32>
    %c366_i32 = arith.constant 366 : i32
    %38 = tpu.dynamic_rotate %4 by %c366_i32 dim 1 : vector<4x384xf32>, i32 -> vector<4x384xf32>
    %c7 = arith.constant 7 : index
    %c0_27 = arith.constant 0 : index
    %c0_28 = arith.constant 0 : index
    %39 = vector.load %arg2[%c7, %c0_27, %c0_28] : memref<9x8x4xf32, #tpu.memory_space<vmem>>, vector<1x8x4xf32>
    %40 = vector.shape_cast %39 : vector<1x8x4xf32> to vector<8x4xf32>
    %cst_29 = arith.constant dense<0.000000e+00> : vector<8x384xf32>
    %41 = tpu.matmul %40, %38, %cst_29 {dimension_numbers = #tpu.dot_dimension_numbers<[1], [0], [0], [1], [0, 0, 1, 1], [], []>} : vector<8x4xf32>, vector<4x384xf32>, vector<8x384xf32> -> vector<8x384xf32>
    %42 = arith.addf %37, %41 : vector<8x384xf32>
    %c365_i32 = arith.constant 365 : i32
    %43 = tpu.dynamic_rotate %4 by %c365_i32 dim 1 : vector<4x384xf32>, i32 -> vector<4x384xf32>
    %c8 = arith.constant 8 : index
    %c0_30 = arith.constant 0 : index
    %c0_31 = arith.constant 0 : index
    %44 = vector.load %arg2[%c8, %c0_30, %c0_31] : memref<9x8x4xf32, #tpu.memory_space<vmem>>, vector<1x8x4xf32>
    %45 = vector.shape_cast %44 : vector<1x8x4xf32> to vector<8x4xf32>
    %cst_32 = arith.constant dense<0.000000e+00> : vector<8x384xf32>
    %46 = tpu.matmul %45, %43, %cst_32 {dimension_numbers = #tpu.dot_dimension_numbers<[1], [0], [0], [1], [0, 0, 1, 1], [], []>} : vector<8x4xf32>, vector<4x384xf32>, vector<8x384xf32> -> vector<8x384xf32>
    %47 = arith.addf %42, %46 : vector<8x384xf32>
    %cst_33 = arith.constant 0.000000e+00 : f32
    %48 = vector.broadcast %cst_33 : f32 to vector<8x384xf32>
    %49 = arith.maximumf %47, %48 : vector<8x384xf32>
    %50 = vector.broadcast %0 : vector<1x384xf32> to vector<8x384xf32>
    %51 = arith.mulf %49, %50 : vector<8x384xf32>
    %cst_34 = arith.constant dense<0.000000e+00> : vector<8xf32>
    %52 = vector.multi_reduction <add>, %51, %cst_34 [1] : vector<8x384xf32> to vector<8xf32>
    %53 = vector.shape_cast %52 : vector<8xf32> to vector<8x1xf32>
    %54 = arith.addf %1, %53 : vector<8x1xf32>
    %55 = arith.mulf %51, %51 : vector<8x384xf32>
    %cst_35 = arith.constant dense<0.000000e+00> : vector<8xf32>
    %56 = vector.multi_reduction <add>, %55, %cst_35 [1] : vector<8x384xf32> to vector<8xf32>
    %57 = vector.shape_cast %56 : vector<8xf32> to vector<8x1xf32>
    %58 = arith.addf %2, %57 : vector<8x1xf32>
    %c0_36 = arith.constant 0 : index
    %c0_37 = arith.constant 0 : index
    %c0_38 = arith.constant 0 : index
    %59 = vector.load %arg4[%c0_36, %c0_37, %c0_38] : memref<1x8x384xf32, #tpu.memory_space<vmem>>, vector<1x8x384xf32>
    %60 = vector.shape_cast %59 : vector<1x8x384xf32> to vector<8x384xf32>
    %61 = vector.shape_cast %49 : vector<8x384xf32> to vector<1x8x384xf32>
    tpu.vector_store %arg4[%c0_36, %c0_37, %c0_38], %61 {strides = array<i32>} : memref<1x8x384xf32, #tpu.memory_space<vmem>>, vector<1x8x384xf32>,
    %62 = tpu.iota {dimensions = array<i32: 1>} : vector<8x128xi32>
    %c0_i32 = arith.constant 0 : i32
    %63 = vector.broadcast %c0_i32 : i32 to vector<8x128xi32>
    %64 = arith.cmpi eq, %62, %63 : vector<8x128xi32>
    %c1_i32_39 = arith.constant 1 : i32
    %65 = vector.broadcast %c1_i32_39 : i32 to vector<8x128xi32>
    %66 = arith.cmpi eq, %62, %65 : vector<8x128xi32>
    %cst_40 = arith.constant 0.000000e+00 : f32
    %67 = vector.shape_cast %58 : vector<8x1xf32> to vector<8x1xf32>
    %68 = vector.broadcast %67 : vector<8x1xf32> to vector<8x128xf32>
    %69 = vector.broadcast %cst_40 : f32 to vector<8x128xf32>
    %70 = arith.select %66, %68, %69 : vector<8x128xi1>, vector<8x128xf32>
    %71 = vector.shape_cast %54 : vector<8x1xf32> to vector<8x1xf32>
    %72 = vector.broadcast %71 : vector<8x1xf32> to vector<8x128xf32>
    %73 = arith.select %64, %72, %70 : vector<8x128xi1>, vector<8x128xf32>
    %c0_41 = arith.constant 0 : index
    %c0_42 = arith.constant 0 : index
    %c0_43 = arith.constant 0 : index
    %74 = vector.load %arg5[%c0_41, %c0_42, %c0_43] : memref<1x8x128xf32, #tpu.memory_space<vmem>>, vector<1x8x128xf32>
    %75 = vector.shape_cast %74 : vector<1x8x128xf32> to vector<8x128xf32>
    %76 = vector.shape_cast %73 : vector<8x128xf32> to vector<1x8x128xf32>
    tpu.vector_store %arg5[%c0_41, %c0_42, %c0_43], %76 {strides = array<i32>} : memref<1x8x128xf32, #tpu.memory_space<vmem>>, vector<1x8x128xf32>,
    return
  }
  func.func @transform_0(%arg0: i32) -> (i32, i32, i32) {
    %c0_i32 = arith.constant 0 : i32
    %c0_i32_0 = arith.constant 0 : i32
    %c0_i32_1 = arith.constant 0 : i32
    return %arg0, %c0_i32, %c0_i32_0 : i32, i32, i32
  }
  func.func @transform_1(%arg0: i32) -> (i32, i32, i32) {
    %c0_i32 = arith.constant 0 : i32
    %c0_i32_0 = arith.constant 0 : i32
    %c0_i32_1 = arith.constant 0 : i32
    %c0_i32_2 = arith.constant 0 : i32
    return %c0_i32, %c0_i32_0, %c0_i32_1 : i32, i32, i32
  }
  func.func @transform_2(%arg0: i32) -> (i32, i32) {
    %c0_i32 = arith.constant 0 : i32
    %c0_i32_0 = arith.constant 0 : i32
    %c0_i32_1 = arith.constant 0 : i32
    return %c0_i32, %c0_i32_0 : i32, i32
  }
  func.func @transform_3(%arg0: i32) -> (i32, i32, i32) {
    %c0_i32 = arith.constant 0 : i32
    %c0_i32_0 = arith.constant 0 : i32
    %c0_i32_1 = arith.constant 0 : i32
    return %arg0, %c0_i32, %c0_i32_0 : i32, i32, i32
  }
  func.func @transform_4(%arg0: i32) -> (i32, i32, i32) {
    %c0_i32 = arith.constant 0 : i32
    %c0_i32_0 = arith.constant 0 : i32
    %c0_i32_1 = arith.constant 0 : i32
    return %arg0, %c0_i32, %c0_i32_0 : i32, i32, i32
  }
}

module attributes {stable_mosaic.version = 11 : i64} {
  func.func @_bn2_kernel(%arg0: i32, %arg1: memref<1x8x256xf32, #tpu.memory_space<vmem>>, %arg2: memref<8x1xf32, #tpu.memory_space<vmem>>, %arg3: memref<8x1xf32, #tpu.memory_space<vmem>>, %arg4: memref<1x8x256xf32, #tpu.memory_space<vmem>>) attributes {dimension_semantics = [#tpu.dimension_semantics<parallel>], iteration_bounds = array<i64: 2>, scalar_prefetch = 0 : i64, scratch_operands = 0 : i64, tpu.core_type = #tpu.core_type<tc>, window_params = [{transform_indices = @transform_0, window_bounds = array<i64: 1, 8, 256>}, {pipeline_mode = #tpu.pipeline_mode<synchronous>, transform_indices = @transform_1, window_bounds = array<i64: 8, 1>}, {pipeline_mode = #tpu.pipeline_mode<synchronous>, transform_indices = @transform_2, window_bounds = array<i64: 8, 1>}, {transform_indices = @transform_3, window_bounds = array<i64: 1, 8, 256>}]} {
    %c0 = arith.constant 0 : index
    %c0_0 = arith.constant 0 : index
    %c0_1 = arith.constant 0 : index
    %0 = vector.load %arg1[%c0, %c0_0, %c0_1] : memref<1x8x256xf32, #tpu.memory_space<vmem>>, vector<1x8x256xf32>
    %c0_2 = arith.constant 0 : index
    %c0_3 = arith.constant 0 : index
    %1 = vector.load %arg2[%c0_2, %c0_3] : memref<8x1xf32, #tpu.memory_space<vmem>>, vector<8x1xf32>
    %2 = vector.shape_cast %1 : vector<8x1xf32> to vector<1x8x1xf32>
    %3 = vector.broadcast %2 : vector<1x8x1xf32> to vector<1x8x256xf32>
    %4 = arith.mulf %0, %3 : vector<1x8x256xf32>
    %c0_4 = arith.constant 0 : index
    %c0_5 = arith.constant 0 : index
    %5 = vector.load %arg3[%c0_4, %c0_5] : memref<8x1xf32, #tpu.memory_space<vmem>>, vector<8x1xf32>
    %6 = vector.shape_cast %5 : vector<8x1xf32> to vector<1x8x1xf32>
    %7 = vector.broadcast %6 : vector<1x8x1xf32> to vector<1x8x256xf32>
    %8 = arith.addf %4, %7 : vector<1x8x256xf32>
    %c0_6 = arith.constant 0 : index
    %c0_7 = arith.constant 0 : index
    %c0_8 = arith.constant 0 : index
    %9 = vector.load %arg4[%c0_6, %c0_7, %c0_8] : memref<1x8x256xf32, #tpu.memory_space<vmem>>, vector<1x8x256xf32>
    tpu.vector_store %arg4[%c0_6, %c0_7, %c0_8], %8 {strides = array<i32>} : memref<1x8x256xf32, #tpu.memory_space<vmem>>, vector<1x8x256xf32>,
    return
  }
  func.func @transform_0(%arg0: i32) -> (i32, i32, i32) {
    %c0_i32 = arith.constant 0 : i32
    %c0_i32_0 = arith.constant 0 : i32
    %c0_i32_1 = arith.constant 0 : i32
    return %arg0, %c0_i32, %c0_i32_0 : i32, i32, i32
  }
  func.func @transform_1(%arg0: i32) -> (i32, i32) {
    %c0_i32 = arith.constant 0 : i32
    %c0_i32_0 = arith.constant 0 : i32
    %c0_i32_1 = arith.constant 0 : i32
    return %c0_i32, %c0_i32_0 : i32, i32
  }
  func.func @transform_2(%arg0: i32) -> (i32, i32) {
    %c0_i32 = arith.constant 0 : i32
    %c0_i32_0 = arith.constant 0 : i32
    %c0_i32_1 = arith.constant 0 : i32
    return %c0_i32, %c0_i32_0 : i32, i32
  }
  func.func @transform_3(%arg0: i32) -> (i32, i32, i32) {
    %c0_i32 = arith.constant 0 : i32
    %c0_i32_0 = arith.constant 0 : i32
    %c0_i32_1 = arith.constant 0 : i32
    return %arg0, %c0_i32, %c0_i32_0 : i32, i32, i32
  }
}

module attributes {stable_mosaic.version = 11 : i64} {
  func.func @_bn1_conv2_relu_kernel(%arg0: i32, %arg1: memref<1x8x384xf32, #tpu.memory_space<vmem>>, %arg2: memref<1x4x384xf32, #tpu.memory_space<vmem>>, %arg3: memref<9x8x8xf32, #tpu.memory_space<vmem>>, %arg4: memref<8x4xf32, #tpu.memory_space<vmem>>, %arg5: memref<8x1xf32, #tpu.memory_space<vmem>>, %arg6: memref<8x1xf32, #tpu.memory_space<vmem>>, %arg7: memref<1x384xf32, #tpu.memory_space<vmem>>, %arg8: memref<1x8x256xf32, #tpu.memory_space<vmem>>, %arg9: memref<1x8x128xf32, #tpu.memory_space<vmem>>) attributes {dimension_semantics = [#tpu.dimension_semantics<parallel>], iteration_bounds = array<i64: 2>, scalar_prefetch = 0 : i64, scratch_operands = 0 : i64, tpu.core_type = #tpu.core_type<tc>, window_params = [{transform_indices = @transform_0, window_bounds = array<i64: 1, 8, 384>}, {transform_indices = @transform_1, window_bounds = array<i64: 1, 4, 384>}, {pipeline_mode = #tpu.pipeline_mode<synchronous>, transform_indices = @transform_2, window_bounds = array<i64: 9, 8, 8>}, {pipeline_mode = #tpu.pipeline_mode<synchronous>, transform_indices = @transform_3, window_bounds = array<i64: 8, 4>}, {pipeline_mode = #tpu.pipeline_mode<synchronous>, transform_indices = @transform_4, window_bounds = array<i64: 8, 1>}, {pipeline_mode = #tpu.pipeline_mode<synchronous>, transform_indices = @transform_5, window_bounds = array<i64: 8, 1>}, {pipeline_mode = #tpu.pipeline_mode<synchronous>, transform_indices = @transform_6, window_bounds = array<i64: 1, 384>}, {transform_indices = @transform_7, window_bounds = array<i64: 1, 8, 256>}, {transform_indices = @transform_8, window_bounds = array<i64: 1, 8, 128>}]} {
    %c0 = arith.constant 0 : index
    %c0_0 = arith.constant 0 : index
    %0 = vector.load %arg7[%c0, %c0_0] : memref<1x384xf32, #tpu.memory_space<vmem>>, vector<1x384xf32>
    %c0_1 = arith.constant 0 : index
    %c0_2 = arith.constant 0 : index
    %1 = vector.load %arg5[%c0_1, %c0_2] : memref<8x1xf32, #tpu.memory_space<vmem>>, vector<8x1xf32>
    %c0_3 = arith.constant 0 : index
    %c0_4 = arith.constant 0 : index
    %2 = vector.load %arg6[%c0_3, %c0_4] : memref<8x1xf32, #tpu.memory_space<vmem>>, vector<8x1xf32>
    %c0_5 = arith.constant 0 : index
    %c0_6 = arith.constant 0 : index
    %3 = vector.load %arg4[%c0_5, %c0_6] : memref<8x4xf32, #tpu.memory_space<vmem>>, vector<8x4xf32>
    %4 = tpu.iota {dimensions = array<i32: 1>} : vector<1x384xi32>
    %cst = arith.constant 0.000000e+00 : f32
    %5 = vector.broadcast %cst : f32 to vector<8x1xf32>
    %cst_7 = arith.constant 0.000000e+00 : f32
    %6 = vector.broadcast %cst_7 : f32 to vector<8x1xf32>
    %c0_8 = arith.constant 0 : index
    %c0_9 = arith.constant 0 : index
    %c0_10 = arith.constant 0 : index
    %7 = vector.load %arg1[%c0_8, %c0_9, %c0_10] : memref<1x8x384xf32, #tpu.memory_space<vmem>>, vector<1x8x384xf32>
    %8 = vector.shape_cast %7 : vector<1x8x384xf32> to vector<8x384xf32>
    %9 = vector.broadcast %1 : vector<8x1xf32> to vector<8x384xf32>
    %10 = arith.mulf %8, %9 : vector<8x384xf32>
    %11 = vector.broadcast %2 : vector<8x1xf32> to vector<8x384xf32>
    %12 = arith.addf %10, %11 : vector<8x384xf32>
    %13 = vector.broadcast %0 : vector<1x384xf32> to vector<8x384xf32>
    %14 = arith.mulf %12, %13 : vector<8x384xf32>
    %c19_i32 = arith.constant 19 : i32
    %15 = tpu.dynamic_rotate %14 by %c19_i32 dim 1 : vector<8x384xf32>, i32 -> vector<8x384xf32>
    %c0_11 = arith.constant 0 : index
    %c0_12 = arith.constant 0 : index
    %c0_13 = arith.constant 0 : index
    %16 = vector.load %arg3[%c0_11, %c0_12, %c0_13] : memref<9x8x8xf32, #tpu.memory_space<vmem>>, vector<1x8x8xf32>
    %17 = vector.shape_cast %16 : vector<1x8x8xf32> to vector<8x8xf32>
    %cst_14 = arith.constant dense<0.000000e+00> : vector<8x384xf32>
    %18 = tpu.matmul %17, %15, %cst_14 {dimension_numbers = #tpu.dot_dimension_numbers<[1], [0], [0], [1], [0, 0, 1, 1], [], []>} : vector<8x8xf32>, vector<8x384xf32>, vector<8x384xf32> -> vector<8x384xf32>
    %c18_i32 = arith.constant 18 : i32
    %19 = tpu.dynamic_rotate %14 by %c18_i32 dim 1 : vector<8x384xf32>, i32 -> vector<8x384xf32>
    %c1 = arith.constant 1 : index
    %c0_15 = arith.constant 0 : index
    %c0_16 = arith.constant 0 : index
    %20 = vector.load %arg3[%c1, %c0_15, %c0_16] : memref<9x8x8xf32, #tpu.memory_space<vmem>>, vector<1x8x8xf32>
    %21 = vector.shape_cast %20 : vector<1x8x8xf32> to vector<8x8xf32>
    %cst_17 = arith.constant dense<0.000000e+00> : vector<8x384xf32>
    %22 = tpu.matmul %21, %19, %cst_17 {dimension_numbers = #tpu.dot_dimension_numbers<[1], [0], [0], [1], [0, 0, 1, 1], [], []>} : vector<8x8xf32>, vector<8x384xf32>, vector<8x384xf32> -> vector<8x384xf32>
    %23 = arith.addf %18, %22 : vector<8x384xf32>
    %c17_i32 = arith.constant 17 : i32
    %24 = tpu.dynamic_rotate %14 by %c17_i32 dim 1 : vector<8x384xf32>, i32 -> vector<8x384xf32>
    %c2 = arith.constant 2 : index
    %c0_18 = arith.constant 0 : index
    %c0_19 = arith.constant 0 : index
    %25 = vector.load %arg3[%c2, %c0_18, %c0_19] : memref<9x8x8xf32, #tpu.memory_space<vmem>>, vector<1x8x8xf32>
    %26 = vector.shape_cast %25 : vector<1x8x8xf32> to vector<8x8xf32>
    %cst_20 = arith.constant dense<0.000000e+00> : vector<8x384xf32>
    %27 = tpu.matmul %26, %24, %cst_20 {dimension_numbers = #tpu.dot_dimension_numbers<[1], [0], [0], [1], [0, 0, 1, 1], [], []>} : vector<8x8xf32>, vector<8x384xf32>, vector<8x384xf32> -> vector<8x384xf32>
    %28 = arith.addf %23, %27 : vector<8x384xf32>
    %c1_i32 = arith.constant 1 : i32
    %29 = tpu.dynamic_rotate %14 by %c1_i32 dim 1 : vector<8x384xf32>, i32 -> vector<8x384xf32>
    %c3 = arith.constant 3 : index
    %c0_21 = arith.constant 0 : index
    %c0_22 = arith.constant 0 : index
    %30 = vector.load %arg3[%c3, %c0_21, %c0_22] : memref<9x8x8xf32, #tpu.memory_space<vmem>>, vector<1x8x8xf32>
    %31 = vector.shape_cast %30 : vector<1x8x8xf32> to vector<8x8xf32>
    %cst_23 = arith.constant dense<0.000000e+00> : vector<8x384xf32>
    %32 = tpu.matmul %31, %29, %cst_23 {dimension_numbers = #tpu.dot_dimension_numbers<[1], [0], [0], [1], [0, 0, 1, 1], [], []>} : vector<8x8xf32>, vector<8x384xf32>, vector<8x384xf32> -> vector<8x384xf32>
    %33 = arith.addf %28, %32 : vector<8x384xf32>
    %c4 = arith.constant 4 : index
    %c0_24 = arith.constant 0 : index
    %c0_25 = arith.constant 0 : index
    %34 = vector.load %arg3[%c4, %c0_24, %c0_25] : memref<9x8x8xf32, #tpu.memory_space<vmem>>, vector<1x8x8xf32>
    %35 = vector.shape_cast %34 : vector<1x8x8xf32> to vector<8x8xf32>
    %cst_26 = arith.constant dense<0.000000e+00> : vector<8x384xf32>
    %36 = tpu.matmul %35, %14, %cst_26 {dimension_numbers = #tpu.dot_dimension_numbers<[1], [0], [0], [1], [0, 0, 1, 1], [], []>} : vector<8x8xf32>, vector<8x384xf32>, vector<8x384xf32> -> vector<8x384xf32>
    %37 = arith.addf %33, %36 : vector<8x384xf32>
    %c383_i32 = arith.constant 383 : i32
    %38 = tpu.dynamic_rotate %14 by %c383_i32 dim 1 : vector<8x384xf32>, i32 -> vector<8x384xf32>
    %c5 = arith.constant 5 : index
    %c0_27 = arith.constant 0 : index
    %c0_28 = arith.constant 0 : index
    %39 = vector.load %arg3[%c5, %c0_27, %c0_28] : memref<9x8x8xf32, #tpu.memory_space<vmem>>, vector<1x8x8xf32>
    %40 = vector.shape_cast %39 : vector<1x8x8xf32> to vector<8x8xf32>
    %cst_29 = arith.constant dense<0.000000e+00> : vector<8x384xf32>
    %41 = tpu.matmul %40, %38, %cst_29 {dimension_numbers = #tpu.dot_dimension_numbers<[1], [0], [0], [1], [0, 0, 1, 1], [], []>} : vector<8x8xf32>, vector<8x384xf32>, vector<8x384xf32> -> vector<8x384xf32>
    %42 = arith.addf %37, %41 : vector<8x384xf32>
    %c367_i32 = arith.constant 367 : i32
    %43 = tpu.dynamic_rotate %14 by %c367_i32 dim 1 : vector<8x384xf32>, i32 -> vector<8x384xf32>
    %c6 = arith.constant 6 : index
    %c0_30 = arith.constant 0 : index
    %c0_31 = arith.constant 0 : index
    %44 = vector.load %arg3[%c6, %c0_30, %c0_31] : memref<9x8x8xf32, #tpu.memory_space<vmem>>, vector<1x8x8xf32>
    %45 = vector.shape_cast %44 : vector<1x8x8xf32> to vector<8x8xf32>
    %cst_32 = arith.constant dense<0.000000e+00> : vector<8x384xf32>
    %46 = tpu.matmul %45, %43, %cst_32 {dimension_numbers = #tpu.dot_dimension_numbers<[1], [0], [0], [1], [0, 0, 1, 1], [], []>} : vector<8x8xf32>, vector<8x384xf32>, vector<8x384xf32> -> vector<8x384xf32>
    %47 = arith.addf %42, %46 : vector<8x384xf32>
    %c366_i32 = arith.constant 366 : i32
    %48 = tpu.dynamic_rotate %14 by %c366_i32 dim 1 : vector<8x384xf32>, i32 -> vector<8x384xf32>
    %c7 = arith.constant 7 : index
    %c0_33 = arith.constant 0 : index
    %c0_34 = arith.constant 0 : index
    %49 = vector.load %arg3[%c7, %c0_33, %c0_34] : memref<9x8x8xf32, #tpu.memory_space<vmem>>, vector<1x8x8xf32>
    %50 = vector.shape_cast %49 : vector<1x8x8xf32> to vector<8x8xf32>
    %cst_35 = arith.constant dense<0.000000e+00> : vector<8x384xf32>
    %51 = tpu.matmul %50, %48, %cst_35 {dimension_numbers = #tpu.dot_dimension_numbers<[1], [0], [0], [1], [0, 0, 1, 1], [], []>} : vector<8x8xf32>, vector<8x384xf32>, vector<8x384xf32> -> vector<8x384xf32>
    %52 = arith.addf %47, %51 : vector<8x384xf32>
    %c365_i32 = arith.constant 365 : i32
    %53 = tpu.dynamic_rotate %14 by %c365_i32 dim 1 : vector<8x384xf32>, i32 -> vector<8x384xf32>
    %c8 = arith.constant 8 : index
    %c0_36 = arith.constant 0 : index
    %c0_37 = arith.constant 0 : index
    %54 = vector.load %arg3[%c8, %c0_36, %c0_37] : memref<9x8x8xf32, #tpu.memory_space<vmem>>, vector<1x8x8xf32>
    %55 = vector.shape_cast %54 : vector<1x8x8xf32> to vector<8x8xf32>
    %cst_38 = arith.constant dense<0.000000e+00> : vector<8x384xf32>
    %56 = tpu.matmul %55, %53, %cst_38 {dimension_numbers = #tpu.dot_dimension_numbers<[1], [0], [0], [1], [0, 0, 1, 1], [], []>} : vector<8x8xf32>, vector<8x384xf32>, vector<8x384xf32> -> vector<8x384xf32>
    %57 = arith.addf %52, %56 : vector<8x384xf32>
    %c0_39 = arith.constant 0 : index
    %c0_40 = arith.constant 0 : index
    %c0_41 = arith.constant 0 : index
    %58 = vector.load %arg2[%c0_39, %c0_40, %c0_41] : memref<1x4x384xf32, #tpu.memory_space<vmem>>, vector<1x4x384xf32>
    %59 = vector.shape_cast %58 : vector<1x4x384xf32> to vector<4x384xf32>
    %cst_42 = arith.constant dense<0.000000e+00> : vector<8x384xf32>
    %60 = tpu.matmul %3, %59, %cst_42 {dimension_numbers = #tpu.dot_dimension_numbers<[1], [0], [0], [1], [0, 0, 1, 1], [], []>} : vector<8x4xf32>, vector<4x384xf32>, vector<8x384xf32> -> vector<8x384xf32>
    %61 = arith.addf %57, %60 : vector<8x384xf32>
    %cst_43 = arith.constant 0.000000e+00 : f32
    %62 = vector.broadcast %cst_43 : f32 to vector<8x384xf32>
    %63 = arith.maximumf %61, %62 : vector<8x384xf32>
    %64 = vector.broadcast %0 : vector<1x384xf32> to vector<8x384xf32>
    %65 = arith.mulf %63, %64 : vector<8x384xf32>
    %cst_44 = arith.constant dense<0.000000e+00> : vector<8xf32>
    %66 = vector.multi_reduction <add>, %65, %cst_44 [1] : vector<8x384xf32> to vector<8xf32>
    %67 = vector.shape_cast %66 : vector<8xf32> to vector<8x1xf32>
    %68 = arith.addf %5, %67 : vector<8x1xf32>
    %69 = arith.mulf %65, %65 : vector<8x384xf32>
    %cst_45 = arith.constant dense<0.000000e+00> : vector<8xf32>
    %70 = vector.multi_reduction <add>, %69, %cst_45 [1] : vector<8x384xf32> to vector<8xf32>
    %71 = vector.shape_cast %70 : vector<8xf32> to vector<8x1xf32>
    %72 = arith.addf %6, %71 : vector<8x1xf32>
    %cst_46 = arith.constant 0.000000e+00 : f32
    %73 = vector.broadcast %cst_46 : f32 to vector<8x384xf32>
    %c365_i32_47 = arith.constant 365 : i32
    %74 = tpu.dynamic_rotate %63 by %c365_i32_47 dim 1 : vector<8x384xf32>, i32 -> vector<8x384xf32>
    %c0_i32 = arith.constant 0 : i32
    %75 = vector.broadcast %c0_i32 : i32 to vector<1x384xi32>
    %76 = arith.cmpi sge, %4, %75 : vector<1x384xi32>
    %c16_i32 = arith.constant 16 : i32
    %77 = vector.broadcast %c16_i32 : i32 to vector<1x384xi32>
    %78 = arith.cmpi slt, %4, %77 : vector<1x384xi32>
    %79 = arith.andi %76, %78 : vector<1x384xi1>
    %80 = vector.shape_cast %79 : vector<1x384xi1> to vector<1x384xi1>
    %81 = vector.broadcast %80 : vector<1x384xi1> to vector<8x384xi1>
    %82 = arith.select %81, %74, %73 : vector<8x384xi1>, vector<8x384xf32>
    %c363_i32 = arith.constant 363 : i32
    %83 = tpu.dynamic_rotate %63 by %c363_i32 dim 1 : vector<8x384xf32>, i32 -> vector<8x384xf32>
    %c16_i32_48 = arith.constant 16 : i32
    %84 = vector.broadcast %c16_i32_48 : i32 to vector<1x384xi32>
    %85 = arith.cmpi sge, %4, %84 : vector<1x384xi32>
    %c32_i32 = arith.constant 32 : i32
    %86 = vector.broadcast %c32_i32 : i32 to vector<1x384xi32>
    %87 = arith.cmpi slt, %4, %86 : vector<1x384xi32>
    %88 = arith.andi %85, %87 : vector<1x384xi1>
    %89 = vector.shape_cast %88 : vector<1x384xi1> to vector<1x384xi1>
    %90 = vector.broadcast %89 : vector<1x384xi1> to vector<8x384xi1>
    %91 = arith.select %90, %83, %82 : vector<8x384xi1>, vector<8x384xf32>
    %c361_i32 = arith.constant 361 : i32
    %92 = tpu.dynamic_rotate %63 by %c361_i32 dim 1 : vector<8x384xf32>, i32 -> vector<8x384xf32>
    %c32_i32_49 = arith.constant 32 : i32
    %93 = vector.broadcast %c32_i32_49 : i32 to vector<1x384xi32>
    %94 = arith.cmpi sge, %4, %93 : vector<1x384xi32>
    %c48_i32 = arith.constant 48 : i32
    %95 = vector.broadcast %c48_i32 : i32 to vector<1x384xi32>
    %96 = arith.cmpi slt, %4, %95 : vector<1x384xi32>
    %97 = arith.andi %94, %96 : vector<1x384xi1>
    %98 = vector.shape_cast %97 : vector<1x384xi1> to vector<1x384xi1>
    %99 = vector.broadcast %98 : vector<1x384xi1> to vector<8x384xi1>
    %100 = arith.select %99, %92, %91 : vector<8x384xi1>, vector<8x384xf32>
    %c359_i32 = arith.constant 359 : i32
    %101 = tpu.dynamic_rotate %63 by %c359_i32 dim 1 : vector<8x384xf32>, i32 -> vector<8x384xf32>
    %c48_i32_50 = arith.constant 48 : i32
    %102 = vector.broadcast %c48_i32_50 : i32 to vector<1x384xi32>
    %103 = arith.cmpi sge, %4, %102 : vector<1x384xi32>
    %c64_i32 = arith.constant 64 : i32
    %104 = vector.broadcast %c64_i32 : i32 to vector<1x384xi32>
    %105 = arith.cmpi slt, %4, %104 : vector<1x384xi32>
    %106 = arith.andi %103, %105 : vector<1x384xi1>
    %107 = vector.shape_cast %106 : vector<1x384xi1> to vector<1x384xi1>
    %108 = vector.broadcast %107 : vector<1x384xi1> to vector<8x384xi1>
    %109 = arith.select %108, %101, %100 : vector<8x384xi1>, vector<8x384xf32>
    %c357_i32 = arith.constant 357 : i32
    %110 = tpu.dynamic_rotate %63 by %c357_i32 dim 1 : vector<8x384xf32>, i32 -> vector<8x384xf32>
    %c64_i32_51 = arith.constant 64 : i32
    %111 = vector.broadcast %c64_i32_51 : i32 to vector<1x384xi32>
    %112 = arith.cmpi sge, %4, %111 : vector<1x384xi32>
    %c80_i32 = arith.constant 80 : i32
    %113 = vector.broadcast %c80_i32 : i32 to vector<1x384xi32>
    %114 = arith.cmpi slt, %4, %113 : vector<1x384xi32>
    %115 = arith.andi %112, %114 : vector<1x384xi1>
    %116 = vector.shape_cast %115 : vector<1x384xi1> to vector<1x384xi1>
    %117 = vector.broadcast %116 : vector<1x384xi1> to vector<8x384xi1>
    %118 = arith.select %117, %110, %109 : vector<8x384xi1>, vector<8x384xf32>
    %c355_i32 = arith.constant 355 : i32
    %119 = tpu.dynamic_rotate %63 by %c355_i32 dim 1 : vector<8x384xf32>, i32 -> vector<8x384xf32>
    %c80_i32_52 = arith.constant 80 : i32
    %120 = vector.broadcast %c80_i32_52 : i32 to vector<1x384xi32>
    %121 = arith.cmpi sge, %4, %120 : vector<1x384xi32>
    %c96_i32 = arith.constant 96 : i32
    %122 = vector.broadcast %c96_i32 : i32 to vector<1x384xi32>
    %123 = arith.cmpi slt, %4, %122 : vector<1x384xi32>
    %124 = arith.andi %121, %123 : vector<1x384xi1>
    %125 = vector.shape_cast %124 : vector<1x384xi1> to vector<1x384xi1>
    %126 = vector.broadcast %125 : vector<1x384xi1> to vector<8x384xi1>
    %127 = arith.select %126, %119, %118 : vector<8x384xi1>, vector<8x384xf32>
    %c353_i32 = arith.constant 353 : i32
    %128 = tpu.dynamic_rotate %63 by %c353_i32 dim 1 : vector<8x384xf32>, i32 -> vector<8x384xf32>
    %c96_i32_53 = arith.constant 96 : i32
    %129 = vector.broadcast %c96_i32_53 : i32 to vector<1x384xi32>
    %130 = arith.cmpi sge, %4, %129 : vector<1x384xi32>
    %c112_i32 = arith.constant 112 : i32
    %131 = vector.broadcast %c112_i32 : i32 to vector<1x384xi32>
    %132 = arith.cmpi slt, %4, %131 : vector<1x384xi32>
    %133 = arith.andi %130, %132 : vector<1x384xi1>
    %134 = vector.shape_cast %133 : vector<1x384xi1> to vector<1x384xi1>
    %135 = vector.broadcast %134 : vector<1x384xi1> to vector<8x384xi1>
    %136 = arith.select %135, %128, %127 : vector<8x384xi1>, vector<8x384xf32>
    %c351_i32 = arith.constant 351 : i32
    %137 = tpu.dynamic_rotate %63 by %c351_i32 dim 1 : vector<8x384xf32>, i32 -> vector<8x384xf32>
    %c112_i32_54 = arith.constant 112 : i32
    %138 = vector.broadcast %c112_i32_54 : i32 to vector<1x384xi32>
    %139 = arith.cmpi sge, %4, %138 : vector<1x384xi32>
    %c128_i32 = arith.constant 128 : i32
    %140 = vector.broadcast %c128_i32 : i32 to vector<1x384xi32>
    %141 = arith.cmpi slt, %4, %140 : vector<1x384xi32>
    %142 = arith.andi %139, %141 : vector<1x384xi1>
    %143 = vector.shape_cast %142 : vector<1x384xi1> to vector<1x384xi1>
    %144 = vector.broadcast %143 : vector<1x384xi1> to vector<8x384xi1>
    %145 = arith.select %144, %137, %136 : vector<8x384xi1>, vector<8x384xf32>
    %c349_i32 = arith.constant 349 : i32
    %146 = tpu.dynamic_rotate %63 by %c349_i32 dim 1 : vector<8x384xf32>, i32 -> vector<8x384xf32>
    %c128_i32_55 = arith.constant 128 : i32
    %147 = vector.broadcast %c128_i32_55 : i32 to vector<1x384xi32>
    %148 = arith.cmpi sge, %4, %147 : vector<1x384xi32>
    %c144_i32 = arith.constant 144 : i32
    %149 = vector.broadcast %c144_i32 : i32 to vector<1x384xi32>
    %150 = arith.cmpi slt, %4, %149 : vector<1x384xi32>
    %151 = arith.andi %148, %150 : vector<1x384xi1>
    %152 = vector.shape_cast %151 : vector<1x384xi1> to vector<1x384xi1>
    %153 = vector.broadcast %152 : vector<1x384xi1> to vector<8x384xi1>
    %154 = arith.select %153, %146, %145 : vector<8x384xi1>, vector<8x384xf32>
    %c347_i32 = arith.constant 347 : i32
    %155 = tpu.dynamic_rotate %63 by %c347_i32 dim 1 : vector<8x384xf32>, i32 -> vector<8x384xf32>
    %c144_i32_56 = arith.constant 144 : i32
    %156 = vector.broadcast %c144_i32_56 : i32 to vector<1x384xi32>
    %157 = arith.cmpi sge, %4, %156 : vector<1x384xi32>
    %c160_i32 = arith.constant 160 : i32
    %158 = vector.broadcast %c160_i32 : i32 to vector<1x384xi32>
    %159 = arith.cmpi slt, %4, %158 : vector<1x384xi32>
    %160 = arith.andi %157, %159 : vector<1x384xi1>
    %161 = vector.shape_cast %160 : vector<1x384xi1> to vector<1x384xi1>
    %162 = vector.broadcast %161 : vector<1x384xi1> to vector<8x384xi1>
    %163 = arith.select %162, %155, %154 : vector<8x384xi1>, vector<8x384xf32>
    %c345_i32 = arith.constant 345 : i32
    %164 = tpu.dynamic_rotate %63 by %c345_i32 dim 1 : vector<8x384xf32>, i32 -> vector<8x384xf32>
    %c160_i32_57 = arith.constant 160 : i32
    %165 = vector.broadcast %c160_i32_57 : i32 to vector<1x384xi32>
    %166 = arith.cmpi sge, %4, %165 : vector<1x384xi32>
    %c176_i32 = arith.constant 176 : i32
    %167 = vector.broadcast %c176_i32 : i32 to vector<1x384xi32>
    %168 = arith.cmpi slt, %4, %167 : vector<1x384xi32>
    %169 = arith.andi %166, %168 : vector<1x384xi1>
    %170 = vector.shape_cast %169 : vector<1x384xi1> to vector<1x384xi1>
    %171 = vector.broadcast %170 : vector<1x384xi1> to vector<8x384xi1>
    %172 = arith.select %171, %164, %163 : vector<8x384xi1>, vector<8x384xf32>
    %c343_i32 = arith.constant 343 : i32
    %173 = tpu.dynamic_rotate %63 by %c343_i32 dim 1 : vector<8x384xf32>, i32 -> vector<8x384xf32>
    %c176_i32_58 = arith.constant 176 : i32
    %174 = vector.broadcast %c176_i32_58 : i32 to vector<1x384xi32>
    %175 = arith.cmpi sge, %4, %174 : vector<1x384xi32>
    %c192_i32 = arith.constant 192 : i32
    %176 = vector.broadcast %c192_i32 : i32 to vector<1x384xi32>
    %177 = arith.cmpi slt, %4, %176 : vector<1x384xi32>
    %178 = arith.andi %175, %177 : vector<1x384xi1>
    %179 = vector.shape_cast %178 : vector<1x384xi1> to vector<1x384xi1>
    %180 = vector.broadcast %179 : vector<1x384xi1> to vector<8x384xi1>
    %181 = arith.select %180, %173, %172 : vector<8x384xi1>, vector<8x384xf32>
    %c341_i32 = arith.constant 341 : i32
    %182 = tpu.dynamic_rotate %63 by %c341_i32 dim 1 : vector<8x384xf32>, i32 -> vector<8x384xf32>
    %c192_i32_59 = arith.constant 192 : i32
    %183 = vector.broadcast %c192_i32_59 : i32 to vector<1x384xi32>
    %184 = arith.cmpi sge, %4, %183 : vector<1x384xi32>
    %c208_i32 = arith.constant 208 : i32
    %185 = vector.broadcast %c208_i32 : i32 to vector<1x384xi32>
    %186 = arith.cmpi slt, %4, %185 : vector<1x384xi32>
    %187 = arith.andi %184, %186 : vector<1x384xi1>
    %188 = vector.shape_cast %187 : vector<1x384xi1> to vector<1x384xi1>
    %189 = vector.broadcast %188 : vector<1x384xi1> to vector<8x384xi1>
    %190 = arith.select %189, %182, %181 : vector<8x384xi1>, vector<8x384xf32>
    %c339_i32 = arith.constant 339 : i32
    %191 = tpu.dynamic_rotate %63 by %c339_i32 dim 1 : vector<8x384xf32>, i32 -> vector<8x384xf32>
    %c208_i32_60 = arith.constant 208 : i32
    %192 = vector.broadcast %c208_i32_60 : i32 to vector<1x384xi32>
    %193 = arith.cmpi sge, %4, %192 : vector<1x384xi32>
    %c224_i32 = arith.constant 224 : i32
    %194 = vector.broadcast %c224_i32 : i32 to vector<1x384xi32>
    %195 = arith.cmpi slt, %4, %194 : vector<1x384xi32>
    %196 = arith.andi %193, %195 : vector<1x384xi1>
    %197 = vector.shape_cast %196 : vector<1x384xi1> to vector<1x384xi1>
    %198 = vector.broadcast %197 : vector<1x384xi1> to vector<8x384xi1>
    %199 = arith.select %198, %191, %190 : vector<8x384xi1>, vector<8x384xf32>
    %c337_i32 = arith.constant 337 : i32
    %200 = tpu.dynamic_rotate %63 by %c337_i32 dim 1 : vector<8x384xf32>, i32 -> vector<8x384xf32>
    %c224_i32_61 = arith.constant 224 : i32
    %201 = vector.broadcast %c224_i32_61 : i32 to vector<1x384xi32>
    %202 = arith.cmpi sge, %4, %201 : vector<1x384xi32>
    %c240_i32 = arith.constant 240 : i32
    %203 = vector.broadcast %c240_i32 : i32 to vector<1x384xi32>
    %204 = arith.cmpi slt, %4, %203 : vector<1x384xi32>
    %205 = arith.andi %202, %204 : vector<1x384xi1>
    %206 = vector.shape_cast %205 : vector<1x384xi1> to vector<1x384xi1>
    %207 = vector.broadcast %206 : vector<1x384xi1> to vector<8x384xi1>
    %208 = arith.select %207, %200, %199 : vector<8x384xi1>, vector<8x384xf32>
    %c335_i32 = arith.constant 335 : i32
    %209 = tpu.dynamic_rotate %63 by %c335_i32 dim 1 : vector<8x384xf32>, i32 -> vector<8x384xf32>
    %c240_i32_62 = arith.constant 240 : i32
    %210 = vector.broadcast %c240_i32_62 : i32 to vector<1x384xi32>
    %211 = arith.cmpi sge, %4, %210 : vector<1x384xi32>
    %c256_i32 = arith.constant 256 : i32
    %212 = vector.broadcast %c256_i32 : i32 to vector<1x384xi32>
    %213 = arith.cmpi slt, %4, %212 : vector<1x384xi32>
    %214 = arith.andi %211, %213 : vector<1x384xi1>
    %215 = vector.shape_cast %214 : vector<1x384xi1> to vector<1x384xi1>
    %216 = vector.broadcast %215 : vector<1x384xi1> to vector<8x384xi1>
    %217 = arith.select %216, %209, %208 : vector<8x384xi1>, vector<8x384xf32>
    %218 = vector.extract_strided_slice %217 {offsets = [0, 0], sizes = [8, 256], strides = [1, 1]} : vector<8x384xf32> to vector<8x256xf32>
    %c0_63 = arith.constant 0 : index
    %c0_64 = arith.constant 0 : index
    %c0_65 = arith.constant 0 : index
    %219 = vector.load %arg8[%c0_63, %c0_64, %c0_65] : memref<1x8x256xf32, #tpu.memory_space<vmem>>, vector<1x8x256xf32>
    %220 = vector.shape_cast %219 : vector<1x8x256xf32> to vector<8x256xf32>
    %221 = vector.shape_cast %218 : vector<8x256xf32> to vector<1x8x256xf32>
    tpu.vector_store %arg8[%c0_63, %c0_64, %c0_65], %221 {strides = array<i32>} : memref<1x8x256xf32, #tpu.memory_space<vmem>>, vector<1x8x256xf32>,
    %222 = tpu.iota {dimensions = array<i32: 1>} : vector<8x128xi32>
    %c0_i32_66 = arith.constant 0 : i32
    %223 = vector.broadcast %c0_i32_66 : i32 to vector<8x128xi32>
    %224 = arith.cmpi eq, %222, %223 : vector<8x128xi32>
    %c1_i32_67 = arith.constant 1 : i32
    %225 = vector.broadcast %c1_i32_67 : i32 to vector<8x128xi32>
    %226 = arith.cmpi eq, %222, %225 : vector<8x128xi32>
    %cst_68 = arith.constant 0.000000e+00 : f32
    %227 = vector.shape_cast %72 : vector<8x1xf32> to vector<8x1xf32>
    %228 = vector.broadcast %227 : vector<8x1xf32> to vector<8x128xf32>
    %229 = vector.broadcast %cst_68 : f32 to vector<8x128xf32>
    %230 = arith.select %226, %228, %229 : vector<8x128xi1>, vector<8x128xf32>
    %231 = vector.shape_cast %68 : vector<8x1xf32> to vector<8x1xf32>
    %232 = vector.broadcast %231 : vector<8x1xf32> to vector<8x128xf32>
    %233 = arith.select %224, %232, %230 : vector<8x128xi1>, vector<8x128xf32>
    %c0_69 = arith.constant 0 : index
    %c0_70 = arith.constant 0 : index
    %c0_71 = arith.constant 0 : index
    %234 = vector.load %arg9[%c0_69, %c0_70, %c0_71] : memref<1x8x128xf32, #tpu.memory_space<vmem>>, vector<1x8x128xf32>
    %235 = vector.shape_cast %234 : vector<1x8x128xf32> to vector<8x128xf32>
    %236 = vector.shape_cast %233 : vector<8x128xf32> to vector<1x8x128xf32>
    tpu.vector_store %arg9[%c0_69, %c0_70, %c0_71], %236 {strides = array<i32>} : memref<1x8x128xf32, #tpu.memory_space<vmem>>, vector<1x8x128xf32>,
    return
  }
  func.func @transform_0(%arg0: i32) -> (i32, i32, i32) {
    %c0_i32 = arith.constant 0 : i32
    %c0_i32_0 = arith.constant 0 : i32
    %c0_i32_1 = arith.constant 0 : i32
    return %arg0, %c0_i32, %c0_i32_0 : i32, i32, i32
  }
  func.func @transform_1(%arg0: i32) -> (i32, i32, i32) {
    %c0_i32 = arith.constant 0 : i32
    %c0_i32_0 = arith.constant 0 : i32
    %c0_i32_1 = arith.constant 0 : i32
    return %arg0, %c0_i32, %c0_i32_0 : i32, i32, i32
  }
  func.func @transform_2(%arg0: i32) -> (i32, i32, i32) {
    %c0_i32 = arith.constant 0 : i32
    %c0_i32_0 = arith.constant 0 : i32
    %c0_i32_1 = arith.constant 0 : i32
    %c0_i32_2 = arith.constant 0 : i32
    return %c0_i32, %c0_i32_0, %c0_i32_1 : i32, i32, i32
  }
  func.func @transform_3(%arg0: i32) -> (i32, i32) {
    %c0_i32 = arith.constant 0 : i32
    %c0_i32_0 = arith.constant 0 : i32
    %c0_i32_1 = arith.constant 0 : i32
    return %c0_i32, %c0_i32_0 : i32, i32
  }
  func.func @transform_4(%arg0: i32) -> (i32, i32) {
    %c0_i32 = arith.constant 0 : i32
    %c0_i32_0 = arith.constant 0 : i32
    %c0_i32_1 = arith.constant 0 : i32
    return %c0_i32, %c0_i32_0 : i32, i32
  }
  func.func @transform_5(%arg0: i32) -> (i32, i32) {
    %c0_i32 = arith.constant 0 : i32
    %c0_i32_0 = arith.constant 0 : i32
    %c0_i32_1 = arith.constant 0 : i32
    return %c0_i32, %c0_i32_0 : i32, i32
  }
  func.func @transform_6(%arg0: i32) -> (i32, i32) {
    %c0_i32 = arith.constant 0 : i32
    %c0_i32_0 = arith.constant 0 : i32
    %c0_i32_1 = arith.constant 0 : i32
    return %c0_i32, %c0_i32_0 : i32, i32
  }
  func.func @transform_7(%arg0: i32) -> (i32, i32, i32) {
    %c0_i32 = arith.constant 0 : i32
    %c0_i32_0 = arith.constant 0 : i32
    %c0_i32_1 = arith.constant 0 : i32
    return %arg0, %c0_i32, %c0_i32_0 : i32, i32, i32
  }
  func.func @transform_8(%arg0: i32) -> (i32, i32, i32) {
    %c0_i32 = arith.constant 0 : i32
    %c0_i32_0 = arith.constant 0 : i32
    %c0_i32_1 = arith.constant 0 : i32
    return %arg0, %c0_i32, %c0_i32_0 : i32, i32, i32
  }
}

</mosaic_0001>

<bundles_post_ra>
// kernel: resblock_pallas.5
= control target key start
LH: loop header
LB: loop body
LE: loop exit
PB: predicated region body
PF: predicated region fallthrough
CT: control target
= control target key end

     0   :  { %s298_s12 = smov 0   ;;  %s321_s0 = inlined_call_operand.vmem [shape: f32[2,8,256], index: 0, kind: input, shape index: {}]   ;;  %s322_s1 = inlined_call_operand.vmem [shape: f32[8,1], index: 1, kind: input, shape index: {}]   ;;  %s323_s2 = inlined_call_operand.vmem [shape: f32[8,1], index: 2, kind: input, shape index: {}]   ;;  %s324_s3 = inlined_call_operand.vmem [shape: f32[2,8,256], index: 3, kind: output, shape index: {}]  }
   0x1 LB: > { %s246_s13 = sadd.s32 4294967295, %s275_s12   ;;  %p250_p0 = scmp.ge.s32.totalorder %s275_s12, 1  ;;  %s275_s12 = sphi %s298_s12, %s13_s12  }
   0x2   : > { %p137_p1 = scmp.lt.s32.totalorder %s275_s12, 3 }
   0x4   : > { %p138_p2 = pnand %p250_p0, %p137_p1 }
   0x5   : > { %v173_v0 = vld [vmem:[%s322_s1] sm:$0xff] (!%p138_p2)  ;;  %v277_v1 = vmov (!%p138_p2), 0   ;;  %p161_p3 = scmp.lt.s32.totalorder (!%p138_p2), %s246_s13, 1 }
   0x6   : > { %141 = sbr.rel (%p138_p2) target bundleno = 142 (0x8e), region = 32  ;;  %268 = vset.pattern.permute.xlu0 (!%p138_p2), %v277_v1  ;;  %v181_v2 = vld [vmem:[%s323_s2] sm:$0xff] (!%p138_p2) }
   0x7   : > { %176 = vperm.xlu0 (!%p138_p2), %268, %v173_v0  }
   0xb   : > { %184 = vperm.xlu0 (!%p138_p2), %268, %v181_v2  }
   0xd   : > { %s326_s13 = smov (!%p161_p3, %s246_s13), 1 }
   0xe   : > { %s257_s18 = sshll.u32 %s326_s13, 4 }
   0xf   : > { %s165_s21 = scalar_lea.vmem %s321_s0, %s257_s18  ;;  %s170_s24 = scalar_lea.vmem %s324_s3, %s257_s18 }
  0x10   : > { %v171_v4 = vld [vmem:[%s165_s21] sm:$0xff]  ;;  %v172_v5 = vld [vmem:[%s165_s21 + $0x8] sm:$0xff] }
  0x86   : > { %v177_v3 = vpop.permute.xlu0 %176 }
  0x87   : > { %v179_v6 = vmul.f32 %v177_v3, %v171_v4  ;;  %v180_v7 = vmul.f32 %v177_v3, %v172_v5 }
  0x8a   : > { %v185_v8 = vpop.permute.xlu0 %184 }
  0x8b   : > { %v187_v9 = vadd.f32 %v185_v8, %v179_v6  ;;  %v188_v10 = vadd.f32 %v185_v8, %v180_v7 }
  0x8d   : > { %189 = vst [vmem:[%s170_s24] sm:$0xff] %v187_v9  ;;  %190 = vst [vmem:[%s170_s24 + $0x8] sm:$0xff] %v188_v10 }
  0x8e PF: > { %s13_s12 = sadd.s32 1, %s275_s12  }
  0x8f   : > { %p10_p4 = scmp.ge.s32.totalorder %s13_s12, 4  }
  0x91   :  { %12 = sbr.rel (!%p10_p4) target bundleno = 1 (0x1), region = 62 }

// kernel: resblock_pallas.3
= control target key start
LH: loop header
LB: loop body
LE: loop exit
PB: predicated region body
PF: predicated region fallthrough
CT: control target
= control target key end

     0   :  { %s2063_s15 = smov 0   ;;  %s2272_s0 = inlined_call_operand.vmem [shape: f32[2,4,384], index: 0, kind: input, shape index: {}]   ;;  %s2273_s1 = inlined_call_operand.vmem [shape: f32[9,8,4], index: 1, kind: input, shape index: {}]   ;;  %s2274_s2 = inlined_call_operand.vmem [shape: f32[1,384], index: 2, kind: input, shape index: {}]   ;;  %s2275_s3 = inlined_call_operand.vmem [shape: f32[2,8,384], index: 3, kind: output, shape index: {0}]   ;;  %s2276_s4 = inlined_call_operand.vmem [shape: f32[2,8,128], index: 4, kind: output, shape index: {1}]  }
   0x1 LB: > { %s1841_s16 = sadd.s32 4294967295, %s2026_s15   ;;  %p1845_p0 = scmp.ge.s32.totalorder %s2026_s15, 1  ;;  %s2026_s15 = sphi %s2063_s15, %s15_s15  }
   0x2   : > { %p165_p1 = scmp.lt.s32.totalorder %s2026_s15, 3 }
   0x4   : > { %p166_p2 = pnand %p1845_p0, %p165_p1 }
   0x5   : > { %p195_p3 = scmp.lt.s32.totalorder (!%p166_p2), %s1841_s16, 1  ;;  %v2028_v0 = vmov (!%p166_p2), 0.0   ;;  %vm2029_vm0 = vmmov (!%p166_p2), 0   ;;  %s2030_s21 = smov (!%p166_p2), 18   ;;  %v222_v4 = vlaneseq (!%p166_p2)  ;;  %vm245_vm2 = vcmask (!%p166_p2), 1043456   ;;  %v1849_v10 = vld [vmem:[%s2273_s1 + $0x8] sm:$0xff] (!%p166_p2) }
   0x6   : > { %169 = sbr.rel (%p166_p2) target bundleno = 572 (0x23c), region = 32  ;;  %1922 = vmatprep.subr.mxu1 (!%p166_p2), %v2028_v0  ;;  %1924 = vmatprep.mubr.msk.f32.mxu1 (!%p166_p2), %vm2029_vm0, %v2028_v0  ;;  %s2031_s22 = smov (!%p166_p2), 19   ;;  %vm241_vm3 = vcmask (!%p166_p2), 31744   ;;  %v228_v21 = vld [vmem:[%s2273_s1] sm:$0xff] (!%p166_p2)  ;;  %v1860_v29 = vld [vmem:[%s2273_s1 + $0x10] sm:$0xff] (!%p166_p2)  ;;  %v1866_v34 = vld [vmem:[%s2273_s1 + $0x18] sm:$0xff] (!%p166_p2) }
   0x7   : > { %319 = vmatprep.mubr.f32.mxu0 (!%p166_p2), %v2028_v0  ;;  %s2032_s23 = smov (!%p166_p2), 17   ;;  %s2033_s24 = smov (!%p166_p2), 1   ;;  %v2114_v5 = vand.u32 (!%p166_p2), 127, %v222_v4  ;;  %v1872_v39 = vld [vmem:[%s2273_s1 + $0x20] sm:$0xff] (!%p166_p2)  ;;  %v1878_v46 = vld [vmem:[%s2273_s1 + $0x28] sm:$0xff] (!%p166_p2)  ;;  %v1884_v52 = vld [vmem:[%s2273_s1 + $0x30] sm:$0xff] (!%p166_p2) }
   0x8   : > { %s2034_s25 = smov (!%p166_p2), 127   ;;  %s2035_s26 = smov (!%p166_p2), 111   ;;  %v1890_v59 = vld [vmem:[%s2273_s1 + $0x38] sm:$0xff] (!%p166_p2)  ;;  %v1896_v62 = vld [vmem:[%s2273_s1 + $0x40] sm:$0xff] (!%p166_p2)  ;;  %v1717_v63 = vshrl.u32 (!%p166_p2), %v222_v4, 7 }
   0x9   : > { %s2036_s27 = smov (!%p166_p2), 110   ;;  %s2037_s28 = smov (!%p166_p2), 109   ;;  %vm235_vm1 = vcmp.lt.s32.totalorder (!%p166_p2), %v2114_v5, 18  ;;  %vm224_vm4 = vcmp.lt.s32.totalorder (!%p166_p2), %v2114_v5, 19  ;;  %vm555_vm5 = vcmp.lt.s32.totalorder (!%p166_p2), %v2114_v5, 17  ;;  %vm723_vm6 = vcmp.lt.s32.totalorder (!%p166_p2), %v2114_v5, 1 }
   0xa   : > { %vm1046_vm7 = vcmp.lt.s32.totalorder (!%p166_p2), %v2114_v5, 127  ;;  %vm1214_vm8 = vcmp.lt.s32.totalorder (!%p166_p2), %v2114_v5, 111  ;;  %vm1382_vm9 = vcmp.lt.s32.totalorder (!%p166_p2), %v2114_v5, 110  ;;  %vm1550_vm10 = vcmp.lt.s32.totalorder (!%p166_p2), %v2114_v5, 109 }
   0xb   : > { %vm1751_vm11 = vcmp.eq.s32.totalorder (!%p166_p2), %v2114_v5, 1  ;;  %vm1750_vm12 = vcmp.eq.s32.totalorder (!%p166_p2), %v2114_v5, 0 }
   0xd   : > { %s2278_s16 = smov (!%p195_p3, %s1841_s16), 1 }
   0xe   : > { %s1999_s17 = smul.u32 12, %s2278_s16  ;;  %s1848_s29 = sshll.u32 %s2278_s16, 3 }
   0xf   : > { %s208_s6 = scalar_lea.vmem %s2276_s4, %s1848_s29 }
  0x10   : > { %s199_s20 = scalar_lea.vmem %s2272_s0, %s1999_s17 }
  0x11   : > { %v2081_v1 = vld [vmem:[%s199_s20 + $0x8] sm:$0xf]  ;;  %v2083_v2 = vld [vmem:[%s199_s20] sm:$0xff] }
  0x12   : > { %233 = vrot.lane.b32.xlu1 %v2081_v1, %s2030_s21  ;;  %229 = vrot.lane.b32.xlu0 %v2083_v2, %s2030_s21  ;;  %v2089_v3 = vcombine.high %v2083_v2, %v2083_v2 }
  0x16   : > { %216 = vrot.lane.b32.xlu1 %v2083_v2, %s2031_s22  ;;  %231 = vrot.lane.b32.xlu0 %v2089_v3, %s2030_s21 }
  0x1a   : > { %220 = vrot.lane.b32.xlu1 %v2081_v1, %s2031_s22  ;;  %218 = vrot.lane.b32.xlu0 %v2089_v3, %s2031_s22 }
  0x1e   : > { %549 = vrot.lane.b32.xlu0 %v2083_v2, %s2032_s23  ;;  %551 = vrot.lane.b32.xlu1 %v2089_v3, %s2032_s23 }
  0x22   : > { %553 = vrot.lane.b32.xlu0 %v2081_v1, %s2032_s23  ;;  %717 = vrot.lane.b32.xlu1 %v2083_v2, %s2033_s24  ;;  %s2000_s23 = smul.u32 24, %s2278_s16 }
  0x26   : > { %721 = vrot.lane.b32.xlu1 %v2081_v1, %s2033_s24  ;;  %719 = vrot.lane.b32.xlu0 %v2089_v3, %s2033_s24 }
  0x2a   : > { %1042 = vrot.lane.b32.xlu0 %v2089_v3, %s2034_s25  ;;  %1044 = vrot.lane.b32.xlu1 %v2081_v1, %s2034_s25 }
  0x2e   : > { %1040 = vrot.lane.b32.xlu0 %v2083_v2, %s2034_s25  ;;  %1210 = vrot.lane.b32.xlu1 %v2089_v3, %s2035_s26 }
  0x32   : > { %1208 = vrot.lane.b32.xlu1 %v2083_v2, %s2035_s26  ;;  %1212 = vrot.lane.b32.xlu0 %v2081_v1, %s2035_s26 }
  0x36   : > { %1378 = vrot.lane.b32.xlu0 %v2089_v3, %s2036_s27  ;;  %1380 = vrot.lane.b32.xlu1 %v2081_v1, %s2036_s27 }
  0x3a   : > { %1376 = vrot.lane.b32.xlu0 %v2083_v2, %s2036_s27  ;;  %1546 = vrot.lane.b32.xlu1 %v2089_v3, %s2037_s28 }
  0x3e   : > { %1544 = vrot.lane.b32.xlu1 %v2083_v2, %s2037_s28  ;;  %1548 = vrot.lane.b32.xlu0 %v2081_v1, %s2037_s28  ;;  %s204_s28 = scalar_lea.vmem %s2275_s3, %s2000_s23 }
  0x84   : > { %v234_v6 = vpop.permute.xlu1 %233  ;;  %v230_v7 = vpop.permute.xlu0 %229 }
  0x85   : > { %v238_v13 = vsel %vm235_vm1, %v234_v6, %v230_v7 }
  0x88   : > { %v217_v8 = vpop.permute.xlu1 %216  ;;  %v232_v9 = vpop.permute.xlu0 %231 }
  0x89   : > { %v237_v11 = vsel %vm235_vm1, %v230_v7, %v232_v9  ;;  %v236_v12 = vsel %vm235_vm1, %v232_v9, %v234_v6  ;;  %v1722_v6 = vsub.s32 1, %v1717_v63 }
  0x8a   : > { %1850 = vmatprep.subr.msk.mxu0 %vm245_vm2, %v237_v11  ;;  %1923 = vmatpush3.msk.msra.mxu1 %vm245_vm2, %v236_v12 }
  0x8b   : > { %1851 = vmatpush1.msk.msra.mxu0 %vm245_vm2, %v238_v13  ;;  %1925 = vmatmul.mubr.msk.f32.vlgmr.msra.gmra.mrb[0].mxu1 %vm241_vm3, %v1849_v10 }
  0x8c   : > { %v221_v14 = vpop.permute.xlu1 %220  ;;  %1852 = vmatmul.mubr.msk.f32.vlgmr.msra.gmra.mrb[0].mxu0 %vm241_vm3, %v1849_v10  ;;  %v219_v15 = vpop.permute.xlu0 %218  ;;  %1927 = vmatprep.subr.mxu1 %v2028_v0 }
  0x8d   : > { %v227_v16 = vsel %vm224_vm4, %v221_v14, %v217_v8  ;;  %v225_v17 = vsel %vm224_vm4, %v219_v15, %v221_v14  ;;  %v226_v18 = vsel %vm224_vm4, %v217_v8, %v219_v15  ;;  %1929 = vmatprep.mubr.msk.f32.mxu1 %vm2029_vm0, %v2028_v0  ;;  %472 = vmatprep.mubr.f32.mxu0 %v2028_v0 }
  0x8e   : > { %1855 = vmatprep.subr.msk.mxu0 %vm245_vm2, %v226_v18  ;;  %1928 = vmatpush3.msk.msra.mxu1 %vm245_vm2, %v225_v17 }
  0x8f   : > { %1856 = vmatpush1.msk.msra.mxu0 %vm245_vm2, %v227_v16  ;;  %1932 = vmatprep.subr.mxu1 %v2028_v0 }
  0x90   : > { %v550_v19 = vpop.permute.xlu0 %549  ;;  %v552_v20 = vpop.permute.xlu1 %551 }
  0x91   : > { %v557_v22 = vsel %vm555_vm5, %v550_v19, %v552_v20 }
  0x92   : > { %1861 = vmatprep.subr.msk.mxu0 %vm245_vm2, %v557_v22 }
  0x93   : > { %1930 = vmatmul.mubr.msk.f32.vlgmr.msra.gmra.mrb[0].mxu1 %vm241_vm3, %v228_v21 }
  0x94   : > { %1857 = vmatmul.mubr.msk.f32.vlgmr.msra.gmra.mrb[0].mxu0 %vm241_vm3, %v228_v21  ;;  %v554_v23 = vpop.permute.xlu0 %553  ;;  %v718_v24 = vpop.permute.xlu1 %717  ;;  %1934 = vmatprep.mubr.msk.f32.mxu1 %vm2029_vm0, %v2028_v0 }
  0x95   : > { %v556_v25 = vsel %vm555_vm5, %v552_v20, %v554_v23  ;;  %v558_v26 = vsel %vm555_vm5, %v554_v23, %v550_v19  ;;  %637 = vmatprep.mubr.f32.mxu0 %v2028_v0 }
  0x96   : > { %1862 = vmatpush1.msk.msra.mxu0 %vm245_vm2, %v558_v26  ;;  %1933 = vmatpush3.msk.msra.mxu1 %vm245_vm2, %v556_v25 }
  0x97   : > { %1937 = vmatprep.subr.mxu1 %v2028_v0 }
  0x98   : > { %v722_v27 = vpop.permute.xlu1 %721  ;;  %v720_v28 = vpop.permute.xlu0 %719 }
  0x99   : > { %v724_v30 = vsel %vm723_vm6, %v720_v28, %v722_v27  ;;  %v725_v31 = vsel %vm723_vm6, %v718_v24, %v720_v28  ;;  %v726_v32 = vsel %vm723_vm6, %v722_v27, %v718_v24 }
  0x9a   : > { %1867 = vmatprep.subr.msk.mxu0 %vm245_vm2, %v725_v31 }
  0x9b   : > { %1935 = vmatmul.mubr.msk.f32.vlgmr.msra.gmra.mrb[0].mxu1 %vm241_vm3, %v1860_v29 }
  0x9c   : > { %1863 = vmatmul.mubr.msk.f32.vlgmr.msra.gmra.mrb[0].mxu0 %vm241_vm3, %v1860_v29  ;;  %1938 = vmatpush3.msk.msra.mxu1 %vm245_vm2, %v724_v30  ;;  %v1043_v33 = vpop.permute.xlu0 %1042  ;;  %v1045_v35 = vpop.permute.xlu1 %1044 }
  0x9d   : > { %1868 = vmatpush1.msk.msra.mxu0 %vm245_vm2, %v726_v32  ;;  %1939 = vmatprep.mubr.msk.f32.mxu1 %vm2029_vm0, %v2028_v0  ;;  %v1047_v36 = vsel %vm1046_vm7, %v1043_v33, %v1045_v35 }
  0x9e   : > { %805 = vmatprep.mubr.f32.mxu0 %v2028_v0  ;;  %1873 = vmatprep.subr.msk.mxu0 %vm245_vm2, %v2089_v3  ;;  %v1726_v3 = vsub.s32 2, %v1717_v63 }
  0x9f   : > { %1942 = vmatprep.subr.mxu1 %v2028_v0 }
  0xa0   : > { %v1041_v37 = vpop.permute.xlu0 %1040  ;;  %v1211_v38 = vpop.permute.xlu1 %1210 }
  0xa1   : > { %v1049_v41 = vsel %vm1046_vm7, %v1045_v35, %v1041_v37  ;;  %v1048_v42 = vsel %vm1046_vm7, %v1041_v37, %v1043_v33 }
  0xa3   : > { %1940 = vmatmul.mubr.msk.f32.vlgmr.msra.gmra.mrb[0].mxu1 %vm241_vm3, %v1866_v34 }
  0xa4   : > { %1869 = vmatmul.mubr.msk.f32.vlgmr.msra.gmra.mrb[0].mxu0 %vm241_vm3, %v1866_v34  ;;  %1943 = vmatpush3.msk.msra.mxu1 %vm245_vm2, %v2081_v1  ;;  %v1213_v40 = vpop.permute.xlu0 %1212  ;;  %v1209_v44 = vpop.permute.xlu1 %1208  ;;  %v1718_v1 = vsub.s32 0, %v1717_v63 }
  0xa5   : > { %1874 = vmatpush1.msk.msra.mxu0 %vm245_vm2, %v2083_v2  ;;  %1944 = vmatprep.mubr.msk.f32.mxu1 %vm2029_vm0, %v2028_v0  ;;  %v1215_v43 = vsel %vm1214_vm8, %v1211_v38, %v1213_v40  ;;  %v1217_v48 = vsel %vm1214_vm8, %v1213_v40, %v1209_v44  ;;  %v1216_v49 = vsel %vm1214_vm8, %v1209_v44, %v1211_v38  ;;  %v209_v2 = vld [vmem:[%s2274_s2] sm:$0x7] }
  0xa6   : > { %960 = vmatprep.mubr.f32.mxu0 %v2028_v0  ;;  %1879 = vmatprep.subr.msk.mxu0 %vm245_vm2, %v1047_v36  ;;  %v1719_v7 = vrot.slane %v209_v2, %v1718_v1  ;;  %v1727_v9 = vrot.slane %v209_v2, %v1726_v3  ;;  %v1723_v12 = vrot.slane %v209_v2, %v1722_v6 }
  0xa7   : > { %1947 = vmatprep.subr.mxu1 %v2028_v0 }
  0xa8   : > { %v1379_v45 = vpop.permute.xlu0 %1378  ;;  %v1381_v47 = vpop.permute.xlu1 %1380 }
  0xa9   : > { %v1383_v50 = vsel %vm1382_vm9, %v1379_v45, %v1381_v47 }
  0xab   : > { %1945 = vmatmul.mubr.msk.f32.vlgmr.msra.gmra.mrb[0].mxu1 %vm241_vm3, %v1872_v39 }
  0xac   : > { %1875 = vmatmul.mubr.msk.f32.vlgmr.msra.gmra.mrb[0].mxu0 %vm241_vm3, %v1872_v39  ;;  %1948 = vmatpush3.msk.msra.mxu1 %vm245_vm2, %v1049_v41  ;;  %v1377_v51 = vpop.permute.xlu0 %1376  ;;  %v1547_v55 = vpop.permute.xlu1 %1546 }
  0xad   : > { %1880 = vmatpush1.msk.msra.mxu0 %vm245_vm2, %v1048_v42  ;;  %1949 = vmatprep.mubr.msk.f32.mxu1 %vm2029_vm0, %v2028_v0  ;;  %v1385_v54 = vsel %vm1382_vm9, %v1381_v47, %v1377_v51  ;;  %v1384_v56 = vsel %vm1382_vm9, %v1377_v51, %v1379_v45 }
  0xae   : > { %1128 = vmatprep.mubr.f32.mxu0 %v2028_v0  ;;  %1885 = vmatprep.subr.msk.mxu0 %vm245_vm2, %v1215_v43 }
  0xaf   : > { %1952 = vmatprep.subr.mxu1 %v2028_v0 }
  0xb0   : > { %v1549_v53 = vpop.permute.xlu0 %1548  ;;  %v1545_v58 = vpop.permute.xlu1 %1544 }
  0xb1   : > { %v1551_v57 = vsel %vm1550_vm10, %v1547_v55, %v1549_v53  ;;  %v1553_v60 = vsel %vm1550_vm10, %v1549_v53, %v1545_v58  ;;  %v1552_v61 = vsel %vm1550_vm10, %v1545_v58, %v1547_v55 }
  0xb3   : > { %1950 = vmatmul.mubr.msk.f32.vlgmr.msra.gmra.mrb[0].mxu1 %vm241_vm3, %v1878_v46 }
  0xb4   : > { %1881 = vmatmul.mubr.msk.f32.vlgmr.msra.gmra.mrb[0].mxu0 %vm241_vm3, %v1878_v46  ;;  %1953 = vmatpush3.msk.msra.mxu1 %vm245_vm2, %v1217_v48 }
  0xb5   : > { %1886 = vmatpush1.msk.msra.mxu0 %vm245_vm2, %v1216_v49  ;;  %1954 = vmatprep.mubr.msk.f32.mxu1 %vm2029_vm0, %v2028_v0 }
  0xb6   : > { %1296 = vmatprep.mubr.f32.mxu0 %v2028_v0  ;;  %1891 = vmatprep.subr.msk.mxu0 %vm245_vm2, %v1383_v50 }
  0xb7   : > { %1957 = vmatprep.subr.mxu1 %v2028_v0 }
  0xbb   : > { %1955 = vmatmul.mubr.msk.f32.vlgmr.msra.gmra.mrb[0].mxu1 %vm241_vm3, %v1884_v52 }
  0xbc   : > { %1887 = vmatmul.mubr.msk.f32.vlgmr.msra.gmra.mrb[0].mxu0 %vm241_vm3, %v1884_v52  ;;  %1958 = vmatpush3.msk.msra.mxu1 %vm245_vm2, %v1385_v54 }
  0xbd   : > { %1892 = vmatpush1.msk.msra.mxu0 %vm245_vm2, %v1384_v56  ;;  %1959 = vmatprep.mubr.msk.f32.mxu1 %vm2029_vm0, %v2028_v0 }
  0xbe   : > { %1464 = vmatprep.mubr.f32.mxu0 %v2028_v0  ;;  %1897 = vmatprep.subr.msk.mxu0 %vm245_vm2, %v1551_v57 }
  0xbf   : > { %1962 = vmatprep.subr.mxu1 %v2028_v0 }
  0xc3   : > { %1960 = vmatmul.mubr.msk.f32.vlgmr.msra.gmra.mrb[0].mxu1 %vm241_vm3, %v1890_v59 }
  0xc4   : > { %1893 = vmatmul.mubr.msk.f32.vlgmr.msra.gmra.mrb[0].mxu0 %vm241_vm3, %v1890_v59  ;;  %1963 = vmatpush3.msk.msra.mxu1 %vm245_vm2, %v1553_v60 }
  0xc5   : > { %1898 = vmatpush1.msk.msra.mxu0 %vm245_vm2, %v1552_v61  ;;  %1964 = vmatprep.mubr.msk.f32.mxu1 %vm2029_vm0, %v2028_v0 }
  0xc6   : > { %1632 = vmatprep.mubr.f32.mxu0 %v2028_v0 }
  0xcb   : > { %1965 = vmatmul.mubr.msk.f32.vlgmr.msra.gmra.mrb[0].mxu1 %vm241_vm3, %v1896_v62 }
  0xcc   : > { %1899 = vmatmul.mubr.msk.f32.vlgmr.msra.gmra.mrb[0].mxu0 %vm241_vm3, %v1896_v62 }
 0x19e   : > { %v1705_v0 = vpop.f32.mrb[0].mxu1 }
 0x19f   : > { %v1714_v8 = vmax.f32 %v1705_v0, 0.0  ;;  %v1634_v10 = vpop.f32.mrb[0].mxu0  ;;  %v1966_v11 = vpop.f32.mrb[1].mxu1 }
 0x1a0   : > { %v1712_v4 = vmax.f32 %v1634_v10, 0.0  ;;  %v1636_v13 = vpop.f32.mrb[1].mxu0 }
 0x1a1   : > { %1749 = vst [vmem:[%s204_s28 + $0x10] sm:$0xff] %v1714_v8  ;;  %v1713_v14 = vmax.f32 %v1636_v13, 0.0  ;;  %v1733_v16 = vmul.f32 %v1727_v9, %v1714_v8 }
 0x1a2   : > { %v1731_v15 = vmul.f32 %v1719_v7, %v1712_v4  ;;  %1747 = vst [vmem:[%s204_s28] sm:$0xff] %v1712_v4 }
 0x1a3   : > { %v1732_v17 = vmul.f32 %v1723_v12, %v1713_v14  ;;  %1748 = vst [vmem:[%s204_s28 + $0x8] sm:$0xff] %v1713_v14  ;;  %v1741_v22 = vmul.f32 %v1733_v16, %v1733_v16 }
 0x1a4   : > { %v1739_v18 = vmul.f32 %v1731_v15, %v1731_v15 }
 0x1a5   : > { %v1740_v19 = vmul.f32 %v1732_v17, %v1732_v17  ;;  %v1734_v20 = vadd.f32 %v1732_v17, %v1731_v15 }
 0x1a7   : > { %v1735_v21 = vadd.f32 %v1734_v20, %v1733_v16  ;;  %v1742_v23 = vadd.f32 %v1740_v19, %v1739_v18 }
 0x1a9   : > { %1736 = vadd.xlane.f32.xlu1 %v1735_v21  ;;  %v1743_v24 = vadd.f32 %v1742_v23, %v1741_v22 }
 0x1ab   : > { %1744 = vadd.xlane.f32.xlu0 %v1743_v24 }
 0x236   : > { %v1737_v26 = vpop.xlane.xlu1 %1736 }
 0x238   : > { %v1745_v25 = vpop.xlane.xlu0 %1744 }
 0x239   : > { %v1752_v27 = vsel %vm1751_vm11, %v1745_v25, 0.0 }
 0x23a   : > { %v1753_v28 = vsel %vm1750_vm12, %v1737_v26, %v1752_v27 }
 0x23b   : > { %1754 = vst [vmem:[%s208_s6] sm:$0xff] %v1753_v28 }
 0x23c PF: > { %s15_s15 = sadd.s32 1, %s2026_s15  }
 0x23d   : > { %p12_p4 = scmp.ge.s32.totalorder %s15_s15, 4  }
 0x23f   :  { %14 = sbr.rel (!%p12_p4) target bundleno = 1 (0x1), region = 82 }

// kernel: resblock_pallas.4
= control target key start
LH: loop header
LB: loop body
LE: loop exit
PB: predicated region body
PF: predicated region fallthrough
CT: control target
= control target key end

     0   :  { %s2683_s27 = smov 0   ;;  %s3078_s0 = inlined_call_operand.vmem [shape: f32[2,8,384], index: 0, kind: input, shape index: {}]   ;;  %s3079_s1 = inlined_call_operand.vmem [shape: f32[2,4,384], index: 1, kind: input, shape index: {}]   ;;  %s3080_s2 = inlined_call_operand.vmem [shape: f32[9,8,8], index: 2, kind: input, shape index: {}]   ;;  %s3081_s3 = inlined_call_operand.vmem [shape: f32[8,4], index: 3, kind: input, shape index: {}]   ;;  %s3082_s4 = inlined_call_operand.vmem [shape: f32[8,1], index: 4, kind: input, shape index: {}]   ;;  %s3083_s5 = inlined_call_operand.vmem [shape: f32[8,1], index: 5, kind: input, shape index: {}]   ;;  %s3084_s6 = inlined_call_operand.vmem [shape: f32[1,384], index: 6, kind: input, shape index: {}]   ;;  %s3085_s7 = inlined_call_operand.vmem [shape: f32[2,8,256], index: 7, kind: output, shape index: {0}]   ;;  %s3086_s8 = inlined_call_operand.vmem [shape: f32[2,8,128], index: 8, kind: output, shape index: {1}]  }
   0x1 LB: > { %s2416_s28 = sadd.s32 4294967295, %s2610_s27   ;;  %p2420_p0 = scmp.ge.s32.totalorder %s2610_s27, 1  ;;  %s2610_s27 = sphi %s2683_s27, %s19_s27  }
   0x2   : > { %p275_p1 = scmp.lt.s32.totalorder %s2610_s27, 3 }
   0x4   : > { %p276_p2 = pnand %p2420_p0, %p275_p1 }
   0x5   : > { %v338_v0 = vld [vmem:[%s3082_s4] sm:$0xff] (!%p276_p2)  ;;  %v2612_v1 = vmov (!%p276_p2), 0   ;;  %p318_p3 = scmp.lt.s32.totalorder (!%p276_p2), %s2416_s28, 1  ;;  %v341_v3 = vlaneseq (!%p276_p2)  ;;  %v2613_v11 = vmov (!%p276_p2), 0.0   ;;  %vm2614_vm0 = vmmov (!%p276_p2), 0   ;;  %s2615_s17 = smov (!%p276_p2), 18  }
   0x6   : > { %279 = sbr.rel (%p276_p2) target bundleno = 791 (0x317), region = 48  ;;  %2602 = vset.pattern.permute.xlu0 (!%p276_p2), %v2612_v1  ;;  %v339_v2 = vld [vmem:[%s3083_s5] sm:$0xff] (!%p276_p2)  ;;  %2480 = vmatprep.subr.mxu1 (!%p276_p2), %v2613_v11  ;;  %s2616_s18 = smov (!%p276_p2), 19   ;;  %v2426_v32 = vld [vmem:[%s3080_s2 + $0x8] sm:$0xff] (!%p276_p2)  ;;  %vm405_vm2 = vcmask (!%p276_p2), 64512   ;;  %v2431_v50 = vld [vmem:[%s3080_s2 + $0x10] sm:$0xff] (!%p276_p2) }
   0x7   : > { %349 = vperm.xlu0 (!%p276_p2), %2602, %v338_v0   ;;  %v365_v4 = vshrl.u32 (!%p276_p2), %v341_v3, 7  ;;  %v337_v10 = vld [vmem:[%s3084_s6] sm:$0x7] (!%p276_p2)  ;;  %473 = vmatprep.mubr.f32.mxu0 (!%p276_p2), %v2613_v11  ;;  %s2617_s19 = smov (!%p276_p2), 17   ;;  %s2618_s20 = smov (!%p276_p2), 1   ;;  %v2752_v27 = vand.u32 (!%p276_p2), 127, %v341_v3 }
   0x8   : > { %2482 = vmatprep.mubr.msk.f32.mxu1 (!%p276_p2), %vm2614_vm0, %v2613_v11  ;;  %s2619_s21 = smov (!%p276_p2), 127   ;;  %s2620_s22 = smov (!%p276_p2), 111   ;;  %v392_v40 = vld [vmem:[%s3080_s2] sm:$0xff] (!%p276_p2)  ;;  %v2434_v57 = vld [vmem:[%s3080_s2 + $0x18] sm:$0xff] (!%p276_p2)  ;;  %vm1806_vm10 = vcmask (!%p276_p2), 1043456   ;;  %vm1802_vm11 = vcmask (!%p276_p2), 31744  }
   0x9   : > { %v366_v5 = vsub.s32 (!%p276_p2), 0, %v365_v4  ;;  %v374_v6 = vsub.s32 (!%p276_p2), 2, %v365_v4  ;;  %v370_v13 = vsub.s32 (!%p276_p2), 1, %v365_v4  ;;  %s2621_s23 = smov (!%p276_p2), 110   ;;  %s2622_s24 = smov (!%p276_p2), 109   ;;  %vm399_vm1 = vcmp.lt.s32.totalorder (!%p276_p2), %v2752_v27, 18 }
   0xa   : > { %vm388_vm3 = vcmp.lt.s32.totalorder (!%p276_p2), %v2752_v27, 19  ;;  %vm700_vm4 = vcmp.lt.s32.totalorder (!%p276_p2), %v2752_v27, 17  ;;  %vm859_vm5 = vcmp.lt.s32.totalorder (!%p276_p2), %v2752_v27, 1  ;;  %vm1167_vm6 = vcmp.lt.s32.totalorder (!%p276_p2), %v2752_v27, 127  ;;  %v2437_v61 = vld [vmem:[%s3080_s2 + $0x20] sm:$0xff] (!%p276_p2)  ;;  %v2440_v4 = vld [vmem:[%s3080_s2 + $0x28] sm:$0xff] (!%p276_p2) }
   0xb   : > { %357 = vperm.xlu0 (!%p276_p2), %2602, %v339_v2   ;;  %v2710_v16 = vrot.slane (!%p276_p2), %v337_v10, %v366_v5  ;;  %v2712_v17 = vrot.slane (!%p276_p2), %v337_v10, %v374_v6  ;;  %v2714_v23 = vrot.slane (!%p276_p2), %v337_v10, %v370_v13  ;;  %vm1326_vm7 = vcmp.lt.s32.totalorder (!%p276_p2), %v2752_v27, 111  ;;  %v2443_v10 = vld [vmem:[%s3080_s2 + $0x30] sm:$0xff] (!%p276_p2)  ;;  %s2623_s10 = smov (!%p276_p2), 93   ;;  %s2625_s12 = smov (!%p276_p2), 107  }
   0xc   : > { %vm1485_vm8 = vcmp.lt.s32.totalorder (!%p276_p2), %v2752_v27, 110  ;;  %vm1644_vm9 = vcmp.lt.s32.totalorder (!%p276_p2), %v2752_v27, 109  ;;  %s2626_s13 = smov (!%p276_p2), 89   ;;  %s2628_s15 = smov (!%p276_p2), 87   ;;  %vm2149_vm12 = vcmp.lt.s32.totalorder (!%p276_p2), %v2752_v27, 93 }
   0xd   : > { %s3114_s28 = smov (!%p318_p3, %s2416_s28), 1  ;;  %s2629_s16 = smov 103  }
   0xe   : > { %s2566_s11 = smul.u32 24, %s3114_s28  ;;  %s2459_s25 = sshll.u32 %s3114_s28, 4 }
   0xf   : > { %s332_s30 = scalar_lea.vmem %s3085_s7, %s2459_s25  ;;  %s2425_s9 = sshll.u32 %s3114_s28, 3 }
  0x10   : > { %s322_s14 = scalar_lea.vmem %s3078_s0, %s2566_s11  ;;  %s2624_s11 = smov 91  }
  0x11   : > { %v344_v8 = vld [vmem:[%s322_s14] sm:$0xff]  ;;  %v346_v9 = vld [vmem:[%s322_s14 + $0x10] sm:$0xff]  ;;  %v345_v12 = vld [vmem:[%s322_s14 + $0x8] sm:$0xff]  ;;  %s2627_s14 = smov 105  }
  0x86   : > { %v350_v7 = vpop.permute.xlu0 %349 }
  0x87   : > { %v352_v14 = vmul.f32 %v350_v7, %v344_v8  ;;  %v354_v15 = vmul.f32 %v350_v7, %v346_v9  ;;  %v353_v19 = vmul.f32 %v350_v7, %v345_v12 }
  0x8a   : > { %v358_v18 = vpop.permute.xlu0 %357 }
  0x8b   : > { %v360_v20 = vadd.f32 %v358_v18, %v352_v14  ;;  %v362_v21 = vadd.f32 %v358_v18, %v354_v15  ;;  %v361_v22 = vadd.f32 %v358_v18, %v353_v19 }
  0x8d   : > { %v2717_v24 = vmul.f32 %v2710_v16, %v360_v20  ;;  %v2720_v25 = vmul.f32 %v2712_v17, %v362_v21  ;;  %v2725_v26 = vmul.f32 %v2714_v23, %v361_v22  ;;  %v2446_v20 = vld [vmem:[%s3080_s2 + $0x38] sm:$0xff] }
  0x8f   : > { %397 = vrot.lane.b32.xlu0 %v2720_v25, %s2615_s17  ;;  %393 = vrot.lane.b32.xlu1 %v2717_v24, %s2615_s17 }
  0x93   : > { %384 = vrot.lane.b32.xlu0 %v2725_v26, %s2616_s18  ;;  %395 = vrot.lane.b32.xlu1 %v2725_v26, %s2615_s17  ;;  %s2630_s17 = smov 85  }
  0x97   : > { %694 = vrot.lane.b32.xlu0 %v2717_v24, %s2617_s19  ;;  %382 = vrot.lane.b32.xlu1 %v2717_v24, %s2616_s18 }
  0x9b   : > { %698 = vrot.lane.b32.xlu0 %v2720_v25, %s2617_s19  ;;  %386 = vrot.lane.b32.xlu1 %v2720_v25, %s2616_s18  ;;  %s2631_s18 = smov 101  }
  0x9f   : > { %855 = vrot.lane.b32.xlu0 %v2725_v26, %s2618_s20  ;;  %696 = vrot.lane.b32.xlu1 %v2725_v26, %s2617_s19  ;;  %s2567_s19 = smul.u32 12, %s3114_s28 }
  0xa3   : > { %1163 = vrot.lane.b32.xlu0 %v2725_v26, %s2619_s21  ;;  %853 = vrot.lane.b32.xlu1 %v2717_v24, %s2618_s20 }
  0xa7   : > { %1161 = vrot.lane.b32.xlu0 %v2717_v24, %s2619_s21  ;;  %857 = vrot.lane.b32.xlu1 %v2720_v25, %s2618_s20  ;;  %s2633_s20 = smov 99  }
  0xab   : > { %1324 = vrot.lane.b32.xlu0 %v2720_v25, %s2620_s22  ;;  %1165 = vrot.lane.b32.xlu1 %v2720_v25, %s2619_s21  ;;  %s2634_s21 = smov 81  }
  0xaf   : > { %1481 = vrot.lane.b32.xlu0 %v2725_v26, %s2621_s23  ;;  %1322 = vrot.lane.b32.xlu1 %v2725_v26, %s2620_s22 }
  0xb3   : > { %1479 = vrot.lane.b32.xlu0 %v2717_v24, %s2621_s23  ;;  %1320 = vrot.lane.b32.xlu1 %v2717_v24, %s2620_s22  ;;  %s327_s22 = scalar_lea.vmem %s3079_s1, %s2567_s19  ;;  %s2632_s19 = smov 83  }
  0xb4   : > { %v1797_v21 = vld [vmem:[%s327_s22] sm:$0xff] }
  0xb7   : > { %1642 = vrot.lane.b32.xlu0 %v2720_v25, %s2622_s24  ;;  %1483 = vrot.lane.b32.xlu1 %v2720_v25, %s2621_s23  ;;  %s2636_s23 = smov 95  }
  0xbb   : > { %1640 = vrot.lane.b32.xlu1 %v2725_v26, %s2622_s24 }
  0xbf   : > { %1638 = vrot.lane.b32.xlu1 %v2717_v24, %s2622_s24 }
 0x101   : > { %v398_v28 = vpop.permute.xlu0 %397  ;;  %v394_v29 = vpop.permute.xlu1 %393 }
 0x102   : > { %v402_v35 = vsel %vm399_vm1, %v398_v28, %v394_v29 }
 0x105   : > { %v385_v30 = vpop.permute.xlu0 %384  ;;  %v396_v31 = vpop.permute.xlu1 %395 }
 0x106   : > { %v401_v33 = vsel %vm399_vm1, %v394_v29, %v396_v31  ;;  %v400_v34 = vsel %vm399_vm1, %v396_v31, %v398_v28  ;;  %v1798_v28 = vld [vmem:[%s327_s22 + $0x8] sm:$0xf]  ;;  %v340_v29 = vld [vmem:[%s3081_s3] sm:$0xff]  ;;  %s2635_s22 = smov 97  }
 0x107   : > { %409 = vmatprep.subr.mxu0 %v401_v33  ;;  %2481 = vmatpush3.msra.mxu1 %v400_v34 }
 0x108   : > { %410 = vmatpush1.msra.mxu0 %v402_v35  ;;  %2483 = vmatmul.mubr.msk.f32.vlgmr.msra.gmra.mrb[0].mxu1 %vm405_vm2, %v2426_v32 }
 0x109   : > { %v695_v36 = vpop.permute.xlu0 %694  ;;  %2427 = vmatmul.mubr.msk.f32.vlgmr.msra.gmra.mrb[0].mxu0 %vm405_vm2, %v2426_v32  ;;  %v383_v37 = vpop.permute.xlu1 %382  ;;  %2485 = vmatprep.subr.mxu1 %v2613_v11 }
 0x10a   : > { %v390_v38 = vsel %vm388_vm3, %v383_v37, %v385_v30  ;;  %2487 = vmatprep.mubr.msk.f32.mxu1 %vm2614_vm0, %v2613_v11  ;;  %617 = vmatprep.mubr.f32.mxu0 %v2613_v11 }
 0x10b   : > { %553 = vmatprep.subr.mxu0 %v390_v38 }
 0x10d   : > { %v387_v39 = vpop.permute.xlu1 %386  ;;  %v699_v43 = vpop.permute.xlu0 %698 }
 0x10e   : > { %v389_v41 = vsel %vm388_vm3, %v385_v30, %v387_v39  ;;  %v391_v42 = vsel %vm388_vm3, %v387_v39, %v383_v37  ;;  %v703_v47 = vsel %vm700_vm4, %v699_v43, %v695_v36 }
 0x10f   : > { %554 = vmatpush1.msra.mxu0 %v391_v42  ;;  %2486 = vmatpush3.msra.mxu1 %v389_v41 }
 0x110   : > { %2488 = vmatmul.mubr.msk.f32.vlgmr.msra.gmra.mrb[0].mxu1 %vm405_vm2, %v392_v40  ;;  %2490 = vmatprep.subr.mxu1 %v2613_v11 }
 0x111   : > { %2429 = vmatmul.mubr.msk.f32.vlgmr.msra.gmra.mrb[0].mxu0 %vm405_vm2, %v392_v40  ;;  %v697_v44 = vpop.permute.xlu1 %696  ;;  %2492 = vmatprep.mubr.msk.f32.mxu1 %vm2614_vm0, %v2613_v11  ;;  %v856_v48 = vpop.permute.xlu0 %855 }
 0x112   : > { %v701_v45 = vsel %vm700_vm4, %v697_v44, %v699_v43  ;;  %v702_v46 = vsel %vm700_vm4, %v695_v36, %v697_v44  ;;  %773 = vmatprep.mubr.f32.mxu0 %v2613_v11  ;;  %vm2191_vm4 = vcmp.lt.s32.totalorder %v2752_v27, 89 }
 0x113   : > { %709 = vmatprep.subr.mxu0 %v702_v46  ;;  %2491 = vmatpush3.msra.mxu1 %v701_v45 }
 0x114   : > { %710 = vmatpush1.msra.mxu0 %v703_v47  ;;  %2495 = vmatprep.subr.mxu1 %v2613_v11 }
 0x115   : > { %v854_v49 = vpop.permute.xlu1 %853  ;;  %v1164_v55 = vpop.permute.xlu0 %1163 }
 0x116   : > { %v861_v51 = vsel %vm859_vm5, %v854_v49, %v856_v48 }
 0x117   : > { %868 = vmatprep.subr.mxu0 %v861_v51 }
 0x118   : > { %2493 = vmatmul.mubr.msk.f32.vlgmr.msra.gmra.mrb[0].mxu1 %vm405_vm2, %v2431_v50 }
 0x119   : > { %2432 = vmatmul.mubr.msk.f32.vlgmr.msra.gmra.mrb[0].mxu0 %vm405_vm2, %v2431_v50  ;;  %v858_v52 = vpop.permute.xlu1 %857  ;;  %2497 = vmatprep.mubr.msk.f32.mxu1 %vm2614_vm0, %v2613_v11  ;;  %v1162_v58 = vpop.permute.xlu0 %1161 }
 0x11a   : > { %v860_v53 = vsel %vm859_vm5, %v856_v48, %v858_v52  ;;  %v862_v54 = vsel %vm859_vm5, %v858_v52, %v854_v49  ;;  %932 = vmatprep.mubr.f32.mxu0 %v2613_v11  ;;  %v1169_v0 = vsel %vm1167_vm6, %v1162_v58, %v1164_v55 }
 0x11b   : > { %869 = vmatpush1.msra.mxu0 %v862_v54  ;;  %2496 = vmatpush3.msra.mxu1 %v860_v53 }
 0x11c   : > { %1017 = vmatprep.subr.mxu0 %v2725_v26  ;;  %2500 = vmatprep.subr.mxu1 %v2613_v11  ;;  %v2449_v26 = vld [vmem:[%s3080_s2 + $0x40] sm:$0xff] }
 0x11d   : > { %v1166_v56 = vpop.permute.xlu1 %1165  ;;  %v1325_v62 = vpop.permute.xlu0 %1324 }
 0x11e   : > { %v1168_v59 = vsel %vm1167_vm6, %v1164_v55, %v1166_v56  ;;  %v1170_v63 = vsel %vm1167_vm6, %v1166_v56, %v1162_v58 }
 0x120   : > { %2498 = vmatmul.mubr.msk.f32.vlgmr.msra.gmra.mrb[0].mxu1 %vm405_vm2, %v2434_v57 }
 0x121   : > { %2501 = vmatpush3.msra.mxu1 %v2720_v25  ;;  %2435 = vmatmul.mubr.msk.f32.vlgmr.msra.gmra.mrb[0].mxu0 %vm405_vm2, %v2434_v57  ;;  %v1323_v60 = vpop.permute.xlu1 %1322  ;;  %v1482_v3 = vpop.permute.xlu0 %1481 }
 0x122   : > { %1018 = vmatpush1.msra.mxu0 %v2717_v24  ;;  %2502 = vmatprep.mubr.msk.f32.mxu1 %vm2614_vm0, %v2613_v11  ;;  %v1327_v2 = vsel %vm1326_vm7, %v1323_v60, %v1325_v62  ;;  %v1801_v24 = vcombine.high %v1797_v21, %v1797_v21 }
 0x123   : > { %1176 = vmatprep.subr.mxu0 %v1168_v59  ;;  %2505 = vmatprep.subr.mxu1 %v2613_v11  ;;  %v2909_v59 = vadd.s32 128, %v2752_v27 }
 0x124   : > { %1081 = vmatprep.mubr.f32.mxu0 %v2613_v11 }
 0x125   : > { %v1321_v1 = vpop.permute.xlu1 %1320  ;;  %v1480_v9 = vpop.permute.xlu0 %1479  ;;  %vm2174_vm13 = vcmp.ge.s32.totalorder %v2909_v59, 144  ;;  %vm2176_vm14 = vcmp.lt.s32.totalorder %v2909_v59, 160  ;;  %vm2155_vm15 = vcmp.lt.s32.totalorder %v2909_v59, 144  ;;  %vm2197_vm3 = vcmp.lt.s32.totalorder %v2909_v59, 176 }
 0x126   : > { %v1329_v6 = vsel %vm1326_vm7, %v1325_v62, %v1321_v1  ;;  %v1328_v7 = vsel %vm1326_vm7, %v1321_v1, %v1323_v60  ;;  %v1487_v14 = vsel %vm1485_vm8, %v1480_v9, %v1482_v3  ;;  %vm2916_vm1 = vmand %vm2174_vm13, %vm2176_vm14  ;;  %vm2216_vm6 = vcmp.ge.s32.totalorder %v2909_v59, 176 }
 0x127   : > { %vm2218_vm7 = vcmp.lt.s32.totalorder %v2909_v59, 192  ;;  %vm2007_vm13 = vcmp.lt.s32.totalorder %v2752_v27, 32 }
 0x128   : > { %2503 = vmatmul.mubr.msk.f32.vlgmr.msra.gmra.mrb[0].mxu1 %vm405_vm2, %v2437_v61 }
 0x129   : > { %2506 = vmatpush3.msra.mxu1 %v1170_v63  ;;  %2438 = vmatmul.mubr.msk.f32.vlgmr.msra.gmra.mrb[0].mxu0 %vm405_vm2, %v2437_v61  ;;  %v1484_v5 = vpop.permute.xlu1 %1483  ;;  %v1643_v15 = vpop.permute.xlu0 %1642 }
 0x12a   : > { %1177 = vmatpush1.msra.mxu0 %v1169_v0  ;;  %2507 = vmatprep.mubr.msk.f32.mxu1 %vm2614_vm0, %v2613_v11  ;;  %v1486_v8 = vsel %vm1485_vm8, %v1482_v3, %v1484_v5  ;;  %v1488_v13 = vsel %vm1485_vm8, %v1484_v5, %v1480_v9  ;;  %vm2049_vm8 = vcmp.lt.s32.totalorder %v2752_v27, 64 }
 0x12b   : > { %1335 = vmatprep.subr.mxu0 %v1327_v2  ;;  %2510 = vmatprep.subr.mxu1 %v2613_v11 }
 0x12c   : > { %1240 = vmatprep.mubr.f32.mxu0 %v2613_v11 }
 0x12d   : > { %v1641_v12 = vpop.permute.xlu1 %1640 }
 0x12e   : > { %v1645_v18 = vsel %vm1644_vm9, %v1641_v12, %v1643_v15 }
 0x130   : > { %2508 = vmatmul.mubr.msk.f32.vlgmr.msra.gmra.mrb[0].mxu1 %vm405_vm2, %v2440_v4 }
 0x131   : > { %2511 = vmatpush3.msra.mxu1 %v1329_v6  ;;  %2441 = vmatmul.mubr.msk.f32.vlgmr.msra.gmra.mrb[0].mxu0 %vm405_vm2, %v2440_v4  ;;  %v1639_v19 = vpop.permute.xlu1 %1638 }
 0x132   : > { %1336 = vmatpush1.msra.mxu0 %v1328_v7  ;;  %2512 = vmatprep.mubr.msk.f32.mxu1 %vm2614_vm0, %v2613_v11  ;;  %v1647_v22 = vsel %vm1644_vm9, %v1643_v15, %v1639_v19  ;;  %v1646_v25 = vsel %vm1644_vm9, %v1639_v19, %v1641_v12 }
 0x133   : > { %1494 = vmatprep.subr.mxu0 %v1486_v8  ;;  %2515 = vmatprep.subr.mxu1 %v2613_v11 }
 0x134   : > { %1399 = vmatprep.mubr.f32.mxu0 %v2613_v11 }
 0x138   : > { %2513 = vmatmul.mubr.msk.f32.vlgmr.msra.gmra.mrb[0].mxu1 %vm405_vm2, %v2443_v10 }
 0x139   : > { %2516 = vmatpush3.msra.mxu1 %v1488_v13  ;;  %2444 = vmatmul.mubr.msk.f32.vlgmr.msra.gmra.mrb[0].mxu0 %vm405_vm2, %v2443_v10 }
 0x13a   : > { %1495 = vmatpush1.msra.mxu0 %v1487_v14  ;;  %2517 = vmatprep.mubr.msk.f32.mxu1 %vm2614_vm0, %v2613_v11 }
 0x13b   : > { %1653 = vmatprep.subr.mxu0 %v1645_v18  ;;  %2520 = vmatprep.subr.mxu1 %v2613_v11 }
 0x13c   : > { %1558 = vmatprep.mubr.f32.mxu0 %v2613_v11 }
 0x140   : > { %2518 = vmatmul.mubr.msk.f32.vlgmr.msra.gmra.mrb[0].mxu1 %vm405_vm2, %v2446_v20 }
 0x141   : > { %2521 = vmatpush3.msra.mxu1 %v1647_v22  ;;  %2447 = vmatmul.mubr.msk.f32.vlgmr.msra.gmra.mrb[0].mxu0 %vm405_vm2, %v2446_v20 }
 0x142   : > { %1654 = vmatpush1.msra.mxu0 %v1646_v25  ;;  %2522 = vmatprep.mubr.msk.f32.mxu1 %vm2614_vm0, %v2613_v11 }
 0x143   : > { %1717 = vmatprep.mubr.f32.mxu0 %v2613_v11  ;;  %2525 = vmatprep.subr.mxu1 %v2613_v11 }
 0x144   : > { %2452 = vmatprep.subr.msk.mxu0 %vm1806_vm10, %v1801_v24 }
 0x148   : > { %2523 = vmatmul.mubr.msk.f32.vlgmr.msra.gmra.mrb[0].mxu1 %vm405_vm2, %v2449_v26 }
 0x149   : > { %2450 = vmatmul.mubr.msk.f32.vlgmr.msra.gmra.mrb[0].mxu0 %vm405_vm2, %v2449_v26  ;;  %2526 = vmatpush3.msk.msra.mxu1 %vm1806_vm10, %v1798_v28  ;;  %vm2195_vm2 = vcmp.ge.s32.totalorder %v2909_v59, 160 }
 0x14a   : > { %2527 = vmatprep.mubr.msk.f32.mxu1 %vm2614_vm0, %v2613_v11  ;;  %2453 = vmatpush1.msk.msra.mxu0 %vm1806_vm10, %v1797_v21  ;;  %vm2170_vm0 = vcmp.lt.s32.totalorder %v2752_v27, 91  ;;  %vm2199_vm5 = vmand %vm2195_vm2, %vm2197_vm3  ;;  %vm2002_vm10 = vcmp.lt.s32.totalorder %v2752_v27, 107  ;;  %vm2237_vm3 = vcmp.ge.s32.totalorder %v2909_v59, 192  ;;  %vm2070_vm2 = vcmp.lt.s32.totalorder %v2752_v27, 80 }
 0x14b   : > { %1877 = vmatprep.mubr.f32.mxu0 %v2613_v11 }
 0x150   : > { %2528 = vmatmul.mubr.msk.f32.vlgmr.msra.gmra.mrb[0].mxu1 %vm1802_vm11, %v340_v29 }
 0x151   : > { %2454 = vmatmul.mubr.msk.f32.vlgmr.msra.gmra.mrb[0].mxu0 %vm1802_vm11, %v340_v29  ;;  %vm2212_vm11 = vcmp.lt.s32.totalorder %v2752_v27, 87 }
 0x223   : > { %v1950_v30 = vpop.f32.mrb[0].mxu1 }
 0x224   : > { %v1959_v31 = vmax.f32 %v1950_v30, 0.0  ;;  %v1879_v32 = vpop.f32.mrb[0].mxu0  ;;  %v2529_v33 = vpop.f32.mrb[1].mxu1 }
 0x225   : > { %v1957_v34 = vmax.f32 %v1879_v32, 0.0  ;;  %v1881_v35 = vpop.f32.mrb[1].mxu0 }
 0x226   : > { %2147 = vrot.lane.b32.xlu1 %v1959_v31, %s2623_s10  ;;  %v1958_v11 = vmax.f32 %v1881_v35, 0.0  ;;  %v1962_v41 = vmul.f32 %v1959_v31, %v2712_v17 }
 0x227   : > { %1976 = vrot.lane.b32.xlu0 %v1957_v34, %s2622_s24  ;;  %v1960_v36 = vmul.f32 %v1957_v34, %v2710_v16 }
 0x228   : > { %v1961_v37 = vmul.f32 %v1958_v11, %v2714_v23  ;;  %v1970_v44 = vmul.f32 %v1962_v41, %v1962_v41 }
 0x229   : > { %v1968_v39 = vmul.f32 %v1960_v36, %v1960_v36 }
 0x22a   : > { %2168 = vrot.lane.b32.xlu1 %v1959_v31, %s2624_s11  ;;  %v1963_v38 = vadd.f32 %v1961_v37, %v1960_v36  ;;  %v1969_v40 = vmul.f32 %v1961_v37, %v1961_v37 }
 0x22b   : > { %1996 = vrot.lane.b32.xlu0 %v1957_v34, %s2625_s12 }
 0x22c   : > { %v1964_v42 = vadd.f32 %v1963_v38, %v1962_v41  ;;  %v1971_v43 = vadd.f32 %v1969_v40, %v1968_v39 }
 0x22e   : > { %2189 = vrot.lane.b32.xlu1 %v1959_v31, %s2626_s13  ;;  %v1972_v45 = vadd.f32 %v1971_v43, %v1970_v44 }
 0x22f   : > { %2017 = vrot.lane.b32.xlu0 %v1957_v34, %s2627_s14 }
 0x232   : > { %2210 = vrot.lane.b32.xlu1 %v1959_v31, %s2628_s15 }
 0x233   : > { %2038 = vrot.lane.b32.xlu0 %v1957_v34, %s2629_s16 }
 0x236   : > { %2231 = vrot.lane.b32.xlu1 %v1959_v31, %s2630_s17 }
 0x237   : > { %2059 = vrot.lane.b32.xlu0 %v1957_v34, %s2631_s18 }
 0x23a   : > { %2252 = vrot.lane.b32.xlu1 %v1959_v31, %s2632_s19 }
 0x23b   : > { %2080 = vrot.lane.b32.xlu0 %v1957_v34, %s2633_s20 }
 0x23e   : > { %2273 = vrot.lane.b32.xlu1 %v1959_v31, %s2634_s21 }
 0x23f   : > { %2101 = vrot.lane.b32.xlu0 %v1957_v34, %s2635_s22 }
 0x242   : > { %1978 = vrot.lane.b32.xlu1 %v1958_v11, %s2622_s24  ;;  %s2637_s24 = smov 79  }
 0x243   : > { %2122 = vrot.lane.b32.xlu0 %v1957_v34, %s2636_s23 }
 0x246   : > { %1998 = vrot.lane.b32.xlu1 %v1958_v11, %s2625_s12  ;;  %s336_s12 = scalar_lea.vmem %s3086_s8, %s2425_s9 }
 0x247   : > { %2145 = vrot.lane.b32.xlu0 %v1958_v11, %s2623_s10 }
 0x24a   : > { %2019 = vrot.lane.b32.xlu1 %v1958_v11, %s2627_s14 }
 0x24b   : > { %2166 = vrot.lane.b32.xlu0 %v1958_v11, %s2624_s11 }
 0x24e   : > { %2040 = vrot.lane.b32.xlu1 %v1958_v11, %s2629_s16 }
 0x24f   : > { %2187 = vrot.lane.b32.xlu0 %v1958_v11, %s2626_s13 }
 0x252   : > { %2061 = vrot.lane.b32.xlu1 %v1958_v11, %s2631_s18 }
 0x253   : > { %2208 = vrot.lane.b32.xlu0 %v1958_v11, %s2628_s15 }
 0x256   : > { %2082 = vrot.lane.b32.xlu1 %v1958_v11, %s2633_s20 }
 0x257   : > { %2229 = vrot.lane.b32.xlu0 %v1958_v11, %s2630_s17 }
 0x25a   : > { %2103 = vrot.lane.b32.xlu1 %v1958_v11, %s2635_s22 }
 0x25b   : > { %2250 = vrot.lane.b32.xlu0 %v1958_v11, %s2632_s19 }
 0x25e   : > { %2124 = vrot.lane.b32.xlu1 %v1958_v11, %s2636_s23 }
 0x25f   : > { %2271 = vrot.lane.b32.xlu0 %v1958_v11, %s2634_s21 }
 0x27e   : > { %1965 = vadd.xlane.f32.xlu0 %v1964_v42 }
 0x282   : > { %1973 = vadd.xlane.f32.xlu1 %v1972_v45 }
 0x293   : > { %2294 = vrot.lane.b32.xlu1 %v1959_v31, %s2637_s24 }
 0x294   : > { %2292 = vrot.lane.b32.xlu0 %v1958_v11, %s2637_s24 }
 0x298   : > { %v2148_v46 = vpop.permute.xlu1 %2147 }
 0x299   : > { %v2886_v47 = vpop.permute.xlu0 %1976 }
 0x29c   : > { %v2169_v16 = vpop.permute.xlu1 %2168 }
 0x29d   : > { %v2888_v48 = vpop.permute.xlu0 %1996 }
 0x2a0   : > { %v2190_v23 = vpop.permute.xlu1 %2189 }
 0x2a1   : > { %v2890_v49 = vpop.permute.xlu0 %2017 }
 0x2a4   : > { %v2211_v50 = vpop.permute.xlu1 %2210 }
 0x2a5   : > { %v2892_v17 = vpop.permute.xlu0 %2038 }
 0x2a8   : > { %v2894_v51 = vpop.permute.xlu1 %2231 }
 0x2a9   : > { %v2896_v52 = vpop.permute.xlu0 %2059 }
 0x2ac   : > { %v2898_v53 = vpop.permute.xlu1 %2252 }
 0x2ad   : > { %v2900_v54 = vpop.permute.xlu0 %2080 }
 0x2b0   : > { %v2902_v55 = vpop.permute.xlu1 %2273 }
 0x2b1   : > { %v2904_v56 = vpop.permute.xlu0 %2101 }
 0x2b4   : > { %v1979_v57 = vpop.permute.xlu1 %1978 }
 0x2b5   : > { %v2906_v58 = vpop.permute.xlu0 %2122  ;;  %v1983_v18 = vsel %vm1644_vm9, %v2886_v47, %v1979_v57 }
 0x2b8   : > { %v1999_v60 = vpop.permute.xlu1 %1998 }
 0x2b9   : > { %v2146_v61 = vpop.permute.xlu0 %2145  ;;  %v2004_v21 = vsel %vm2002_vm10, %v2888_v48, %v1999_v60  ;;  %vm3098_vm10 = vcmp.ge.s32.totalorder %v2752_v27, 48 }
 0x2ba   : > { %v2150_v62 = vsel %vm2149_vm12, %v2146_v61, %v2148_v46  ;;  %vm2005_vm12 = vcmp.ge.s32.totalorder %v2752_v27, 16 }
 0x2bb   : > { %v2163_v2 = vsel %vm2155_vm15, %v2150_v62, 0.0  ;;  %vm2026_vm15 = vcmp.ge.s32.totalorder %v2752_v27, 32 }
 0x2bc   : > { %v2020_v63 = vpop.permute.xlu1 %2019 }
 0x2bd   : > { %v2167_v1 = vpop.permute.xlu0 %2166 }
 0x2be   : > { %v2171_v3 = vsel %vm2170_vm0, %v2167_v1, %v2169_v16  ;;  %vm2934_vm0 = vmand %vm2216_vm6, %vm2218_vm7  ;;  %vm2068_vm7 = vcmp.ge.s32.totalorder %v2752_v27, 64 }
 0x2bf   : > { %v2184_v4 = vsel %vm2916_vm1, %v2171_v3, %v2163_v2  ;;  %vm2028_vm1 = vcmp.lt.s32.totalorder %v2752_v27, 48  ;;  %vm2947_vm6 = vmand %vm2005_vm12, %vm2007_vm13  ;;  %vm2091_vm13 = vcmp.lt.s32.totalorder %v2752_v27, 96 }
 0x2c0   : > { %v2041_v5 = vpop.permute.xlu1 %2040  ;;  %vm2977_vm9 = vmand %vm2026_vm15, %vm2028_vm1  ;;  %vm2110_vm15 = vcmp.ge.s32.totalorder %v2752_v27, 96  ;;  %vm2112_vm1 = vcmp.lt.s32.totalorder %v2752_v27, 112 }
 0x2c1   : > { %v2188_v6 = vpop.permute.xlu0 %2187  ;;  %vm2991_vm12 = vmand %vm3098_vm10, %vm2049_vm8 }
 0x2c2   : > { %v2192_v7 = vsel %vm2191_vm4, %v2188_v6, %v2190_v23  ;;  %vm2239_vm4 = vcmp.lt.s32.totalorder %v2909_v59, 208  ;;  %vm3009_vm8 = vmand %vm2068_vm7, %vm2070_vm2  ;;  %vm2279_vm7 = vcmp.ge.s32.totalorder %v2909_v59, 224 }
 0x2c3   : > { %v2205_v8 = vsel %vm2199_vm5, %v2192_v7, %v2184_v4  ;;  %vm2233_vm5 = vcmp.lt.s32.totalorder %v2752_v27, 85  ;;  %vm2966_vm14 = vmand %vm2237_vm3, %vm2239_vm4  ;;  %vm2258_vm3 = vcmp.ge.s32.totalorder %v2909_v59, 208  ;;  %vm2260_vm4 = vcmp.lt.s32.totalorder %v2909_v59, 224 }
 0x2c4   : > { %v2062_v9 = vpop.permute.xlu1 %2061  ;;  %vm3023_vm10 = vmand %vm2258_vm3, %vm2260_vm4  ;;  %vm2281_vm3 = vcmp.lt.s32.totalorder %v2909_v59, 240  ;;  %vm2128_vm4 = vcmp.lt.s32.totalorder %v2752_v27, 95 }
 0x2c5   : > { %v2209_v12 = vpop.permute.xlu0 %2208 }
 0x2c6   : > { %v2213_v13 = vsel %vm2212_vm11, %v2209_v12, %v2211_v50  ;;  %vm3097_vm11 = vcmp.lt.s32.totalorder %v2752_v27, 105 }
 0x2c7   : > { %v2226_v15 = vsel %vm2934_vm0, %v2213_v13, %v2205_v8  ;;  %v2025_v25 = vsel %vm3097_vm11, %v2890_v49, %v2020_v63  ;;  %vm3101_vm0 = vcmp.lt.s32.totalorder %v2752_v27, 16  ;;  %vm3102_vm11 = vcmp.lt.s32.totalorder %v2752_v27, 103 }
 0x2c8   : > { %v2083_v19 = vpop.permute.xlu1 %2082  ;;  %v1994_v29 = vsel %vm3101_vm0, %v1983_v18, 0.0  ;;  %v2046_v30 = vsel %vm3102_vm11, %v2892_v17, %v2041_v5  ;;  %vm3105_vm0 = vcmp.lt.s32.totalorder %v2752_v27, 101  ;;  %vm2275_vm11 = vcmp.lt.s32.totalorder %v2752_v27, 81 }
 0x2c9   : > { %v2230_v24 = vpop.permute.xlu0 %2229  ;;  %v2015_v33 = vsel %vm2947_vm6, %v2004_v21, %v1994_v29  ;;  %v2067_v34 = vsel %vm3105_vm0, %v2896_v52, %v2062_v9  ;;  %vm3111_vm6 = vcmp.lt.s32.totalorder %v2752_v27, 99  ;;  %vm2300_vm0 = vcmp.ge.s32.totalorder %v2909_v59, 240 }
 0x2ca   : > { %v2234_v28 = vsel %vm2233_vm5, %v2230_v24, %v2894_v51  ;;  %vm2254_vm5 = vcmp.lt.s32.totalorder %v2752_v27, 83  ;;  %v2036_v36 = vsel %vm2977_vm9, %v2025_v25, %v2015_v33  ;;  %v2088_v38 = vsel %vm3111_vm6, %v2900_v54, %v2083_v19 }
 0x2cb   : > { %v2247_v32 = vsel %vm2966_vm14, %v2234_v28, %v2226_v15  ;;  %vm3108_vm14 = vcmp.ge.s32.totalorder %v2752_v27, 80  ;;  %v2057_v40 = vsel %vm2991_vm12, %v2046_v30, %v2036_v36  ;;  %vm3112_vm9 = vcmp.lt.s32.totalorder %v2752_v27, 97 }
 0x2cc   : > { %v2104_v35 = vpop.permute.xlu1 %2103  ;;  %vm3033_vm2 = vmand %vm3108_vm14, %vm2091_vm13  ;;  %v2078_v43 = vsel %vm3009_vm8, %v2067_v34, %v2057_v40  ;;  %vm2131_vm12 = vcmp.ge.s32.totalorder %v2752_v27, 112  ;;  %vm2313_vm8 = vcmp.eq.s32.totalorder %v2752_v27, 0 }
 0x2cd   : > { %v2251_v39 = vpop.permute.xlu0 %2250  ;;  %vm2114_vm13 = vmand %vm2110_vm15, %vm2112_vm1  ;;  %v2109_v41 = vsel %vm3112_vm9, %v2904_v56, %v2104_v35  ;;  %v2099_v45 = vsel %vm3033_vm2, %v2088_v38, %v2078_v43  ;;  %vm2314_vm1 = vcmp.eq.s32.totalorder %v2752_v27, 1 }
 0x2ce   : > { %v2255_v42 = vsel %vm2254_vm5, %v2251_v39, %v2898_v53  ;;  %vm2283_vm15 = vmand %vm2279_vm7, %vm2281_vm3  ;;  %v2120_v47 = vsel %vm2114_vm13, %v2109_v41, %v2099_v45  ;;  %vm2296_vm5 = vcmp.lt.s32.totalorder %v2752_v27, 79 }
 0x2cf   : > { %v2268_v44 = vsel %vm3023_vm10, %v2255_v42, %v2247_v32 }
 0x2d0   : > { %v2125_v46 = vpop.permute.xlu1 %2124 }
 0x2d1   : > { %v2130_v16 = vsel %vm2128_vm4, %v2906_v58, %v2125_v46  ;;  %v2272_v48 = vpop.permute.xlu0 %2271 }
 0x2d2   : > { %v2141_v23 = vsel %vm2131_vm12, %v2130_v16, %v2120_v47  ;;  %v2276_v49 = vsel %vm2275_vm11, %v2272_v48, %v2902_v55 }
 0x2d3   : > { %2311 = vst [vmem:[%s332_s30] sm:$0xff] %v2141_v23  ;;  %v2289_v50 = vsel %vm2283_vm15, %v2276_v49, %v2268_v44 }
 0x30b   : > { %v1966_v17 = vpop.xlane.xlu0 %1965 }
 0x30f   : > { %v1974_v51 = vpop.xlane.xlu1 %1973  ;;  %v2293_v54 = vpop.permute.xlu0 %2292 }
 0x310   : > { %v2315_v52 = vsel %vm2314_vm1, %v1974_v51, 0.0 }
 0x311   : > { %v2316_v53 = vsel %vm2313_vm8, %v1966_v17, %v2315_v52 }
 0x312   : > { %2317 = vst [vmem:[%s336_s12] sm:$0xff] %v2316_v53 }
 0x313   : > { %v2295_v55 = vpop.permute.xlu1 %2294 }
 0x314   : > { %v2297_v56 = vsel %vm2296_vm5, %v2293_v54, %v2295_v55 }
 0x315   : > { %v2310_v57 = vsel %vm2300_vm0, %v2297_v56, %v2289_v50 }
 0x316   : > { %2312 = vst [vmem:[%s332_s30 + $0x8] sm:$0xff] %v2310_v57 }
 0x317 PF: > { %s19_s27 = sadd.s32 1, %s2610_s27  }
 0x318   : > { %p16_p4 = scmp.ge.s32.totalorder %s19_s27, 4  }
 0x31a   :  { %18 = sbr.rel (!%p16_p4) target bundleno = 1 (0x1), region = 101 }

</bundles_post_ra>
